<compile_context>
chip_gen: v7x
topology: tpu7x:2x2x1
jax: 0.10.0
libtpu: 0.0.40
codegen_flags: <defaults>
</compile_context>

<pallas_src>
import functools

import jax
import jax.numpy as jnp
import numpy as np
from jax import lax
from jax.experimental import pallas as pl
from jax.experimental.pallas import tpu as pltpu

BN_EPS = 1e-5


# --------------------------------------------------------------------------- #
# Kernel 1: theta / phi / g projections (1x1 convs), emitted as bf16.
# --------------------------------------------------------------------------- #
def _proj_kernel(x_ref, wt_ref, bt_ref, wp_ref, bp_ref, wg_ref, bg_ref,
                 th_ref, ph_ref, g_ref):
    """grid = (batch, token_tile).  x_ref: (1, tp, C) f32; outputs (1, tp, Ci) bf16."""
    x = x_ref[0]                                                   # (tp, C)
    th_ref[0] = (jnp.dot(x, wt_ref[...], preferred_element_type=jnp.float32)
                 + bt_ref[...]).astype(th_ref.dtype)
    ph_ref[0] = (jnp.dot(x, wp_ref[...], preferred_element_type=jnp.float32)
                 + bp_ref[...]).astype(ph_ref.dtype)
    g_ref[0] = (jnp.dot(x, wg_ref[...], preferred_element_type=jnp.float32)
                + bg_ref[...]).astype(g_ref.dtype)


# --------------------------------------------------------------------------- #
# Kernel 2: flash-style non-local attention + W_z (BN folded) + residual.
# --------------------------------------------------------------------------- #
def _nl_flash_kernel(th_ref, ph_ref, g_ref, xq_ref, wz_ref, bz_ref,
                     out_ref, m_sc, l_sc, acc_sc):
    """grid = (batch, q_tile, kv_tile); kv_tile is the innermost reduction axis.

    th_ref : (1, tq, Ci) bf16   theta tile (query side)
    ph_ref : (1, tk, Ci) bf16   phi tile   (key side)
    g_ref  : (1, tk, Ci) bf16   g tile     (value side)
    xq_ref : (1, tq, C)  f32    raw input tile (residual)
    wz/bz  : (Ci, C) bf16 / (1, C) f32    W_z with eval-mode BN folded in
    out_ref: (1, tq, C)  f32
    scratch: running max (tq,1), denom (tq,1), accumulator (tq,Ci) -- all f32
    """
    kv = pl.program_id(2)

    @pl.when(kv == 0)
    def _init():
        m_sc[...] = jnp.full_like(m_sc, -jnp.inf)
        l_sc[...] = jnp.zeros_like(l_sc)
        acc_sc[...] = jnp.zeros_like(acc_sc)

    # f = theta @ phi^T : contract the channel axes directly (no transpose),
    # bf16 MXU operands, f32 accumulation.
    f = lax.dot_general(th_ref[0], ph_ref[0],
                        (((1,), (1,)), ((), ())),
                        preferred_element_type=jnp.float32)        # (tq, tk)

    # Online softmax update (numerically identical to softmax over full row).
    m_prev = m_sc[...]
    m_new = jnp.maximum(m_prev, jnp.max(f, axis=-1, keepdims=True))
    alpha = jnp.exp(m_prev - m_new)
    p = jnp.exp(f - m_new)
    l_sc[...] = alpha * l_sc[...] + jnp.sum(p, axis=-1, keepdims=True)
    acc_sc[...] = alpha * acc_sc[...] + jnp.dot(
        p.astype(jnp.bfloat16), g_ref[0], preferred_element_type=jnp.float32)
    m_sc[...] = m_new

    @pl.when(kv == pl.num_programs(2) - 1)
    def _finalize():
        # Normalize after the matmul (EUP reciprocal), then W_z (BN folded)
        # and residual add.
        y = acc_sc[...] * pl.reciprocal(l_sc[...], approx=True)    # (tq, Ci)
        wy = (jnp.dot(y.astype(jnp.bfloat16), wz_ref[...],
                      preferred_element_type=jnp.float32)
              + bz_ref[...])                                        # (tq, C)
        out_ref[0] = (wy + xq_ref[0]).astype(out_ref.dtype)


# --------------------------------------------------------------------------- #
# Tiling / VMEM-budget helpers.
# --------------------------------------------------------------------------- #
def _pick_tile(hw):
    for t in (1024, 512, 256, 128):
        if hw % t == 0:
            return t
    return hw  # small / ragged HW: full-extent block (TODO(synk): pad+mask)


def _flash_vmem_limit(tq, tk, c, ci):
    """Scoped-VMEM limit from the real working set (double-buffered streams +
    scratch + softmax temporaries) with 2x headroom, clamped to [32, 96] MiB."""
    f32, bf16 = 4, 2
    streams = 2 * (tq * ci * bf16            # theta
                   + 2 * tk * ci * bf16      # phi, g
                   + tq * c * f32            # residual x tile
                   + ci * c * bf16           # W_z (bf16, BN folded)
                   + c * f32                 # b_z
                   + tq * c * f32)           # output tile
    scratch = (tq * ci + 2 * tq) * f32       # acc, m, l
    temps = 2 * tq * tk * f32                # logits / exp temporaries
    est = streams + scratch + temps
    return int(min(max(2 * est, 32 << 20), 96 << 20))


def _proj_vmem_limit(tp, c, ci):
    f32, bf16 = 4, 2
    streams = 2 * (tp * c * f32 + 3 * (c * ci + ci) * f32 + 3 * tp * ci * bf16)
    return int(min(max(2 * streams, 32 << 20), 96 << 20))


# --------------------------------------------------------------------------- #
# Forward pass.
# --------------------------------------------------------------------------- #
def nl_block_forward(x_nchw, params, *, tq=None, tk=None, tp=None):
    """NLBlockND forward (mode='embedded', dimension=2, bn_layer=True), eval BN."""
    n, c, h, w = x_nchw.shape
    hw = h * w
    ci = params["wg"].shape[1]
    assert params["wg"].shape == (c, ci)

    if tq is None:
        tq = _pick_tile(hw)
        # v7x megacore (2 TCs): keep the parallel extent n*(hw//tq) even.
        if (n * (hw // tq)) % 2 == 1 and tq >= 256 and hw % (tq // 2) == 0:
            tq //= 2
    if tk is None:
        tk = _pick_tile(hw)
    if tp is None:
        tp = min(_pick_tile(hw), 512)
    assert hw % tq == 0 and hw % tk == 0 and hw % tp == 0

    # Host-side parameter prep (traced, but tiny):
    #  * fold eval-mode BatchNorm into W_z, cast W_z to bf16 (MXU path, half
    #    the resident weight bytes in the attention kernel).
    scale = params["gamma"] / jnp.sqrt(params["running_var"] + BN_EPS)       # (1, C)
    wz_f = (params["wz"] * scale).astype(jnp.bfloat16)                       # (Ci, C)
    bz_f = (params["bz"] - params["running_mean"]) * scale + params["beta"]  # (1, C)

    # NCHW -> (N, HW, C); flattening order matches torch .view(N, C, H*W).
    x_tok = jnp.transpose(x_nchw, (0, 2, 3, 1)).reshape(n, hw, c)

    # ---- stage 1: theta / phi / g projections (bf16) ------------------------
    wfull = lambda shape: pl.BlockSpec(shape, lambda b, i: (0, 0))
    proj_out = jax.ShapeDtypeStruct((n, hw, ci), jnp.bfloat16)
    theta, phi, g = pl.pallas_call(
        _proj_kernel,
        out_shape=(proj_out, proj_out, proj_out),
        grid_spec=pltpu.PrefetchScalarGridSpec(
            num_scalar_prefetch=0,
            grid=(n, hw // tp),
            in_specs=[
                pl.BlockSpec((1, tp, c), lambda b, i: (b, i, 0)),   # x tokens
                wfull((c, ci)), wfull((1, ci)),                     # theta w,b
                wfull((c, ci)), wfull((1, ci)),                     # phi   w,b
                wfull((c, ci)), wfull((1, ci)),                     # g     w,b
            ],
            out_specs=[
                pl.BlockSpec((1, tp, ci), lambda b, i: (b, i, 0)),
                pl.BlockSpec((1, tp, ci), lambda b, i: (b, i, 0)),
                pl.BlockSpec((1, tp, ci), lambda b, i: (b, i, 0)),
            ],
        ),
        compiler_params=pltpu.CompilerParams(
            dimension_semantics=("parallel", "parallel"),
            vmem_limit_bytes=_proj_vmem_limit(tp, c, ci),
        ),
    )(x_tok, params["wt"], params["bt"], params["wp"], params["bp"],
      params["wg"], params["bg"])

    # ---- stage 2: flash attention + W_z + residual ---------------------------
    cfull = lambda shape: pl.BlockSpec(shape, lambda b, qi, ki: (0, 0))
    out = pl.pallas_call(
        _nl_flash_kernel,
        out_shape=jax.ShapeDtypeStruct((n, hw, c), jnp.float32),
        grid_spec=pltpu.PrefetchScalarGridSpec(
            num_scalar_prefetch=0,
            grid=(n, hw // tq, hw // tk),
            in_specs=[
                pl.BlockSpec((1, tq, ci), lambda b, qi, ki: (b, qi, 0)),  # theta
                pl.BlockSpec((1, tk, ci), lambda b, qi, ki: (b, ki, 0)),  # phi
                pl.BlockSpec((1, tk, ci), lambda b, qi, ki: (b, ki, 0)),  # g
                pl.BlockSpec((1, tq, c), lambda b, qi, ki: (b, qi, 0)),   # x (residual)
                cfull((ci, c)),                                           # W_z (BN folded)
                cfull((1, c)),                                            # b_z (BN folded)
            ],
            out_specs=pl.BlockSpec((1, tq, c), lambda b, qi, ki: (b, qi, 0)),
            scratch_shapes=[
                pltpu.VMEM((tq, 1), jnp.float32),    # running row max
                pltpu.VMEM((tq, 1), jnp.float32),    # running denominator
                pltpu.VMEM((tq, ci), jnp.float32),   # output accumulator
            ],
        ),
        compiler_params=pltpu.CompilerParams(
            dimension_semantics=("parallel", "parallel", "arbitrary"),
            vmem_limit_bytes=_flash_vmem_limit(tq, tk, c, ci),
        ),
    )(theta, phi, g, x_tok, wz_f, bz_f)

    # (N, HW, C) -> NCHW.
    return jnp.transpose(out.reshape(n, h, w, c), (0, 3, 1, 2))


# --------------------------------------------------------------------------- #
# Plain-JAX f32 reference mirroring the PyTorch forward (eval-mode BN).
# --------------------------------------------------------------------------- #
def nl_block_reference(x_nchw, params):
    n, c, h, w = x_nchw.shape
    x_flat = x_nchw.reshape(n, c, h * w)                                   # (N, C, HW)

    def conv1x1(xf, w_in_out, b):  # w_in_out: (Cin, Cout), b: (1, Cout)
        return jnp.einsum("nci,co->noi", xf, w_in_out) + b.reshape(1, -1, 1)

    g_x = conv1x1(x_flat, params["wg"], params["bg"]).transpose(0, 2, 1)   # (N, HW, Ci)
    theta_x = conv1x1(x_flat, params["wt"], params["bt"]).transpose(0, 2, 1)
    phi_x = conv1x1(x_flat, params["wp"], params["bp"])                    # (N, Ci, HW)
    f = jnp.einsum("nqc,nck->nqk", theta_x, phi_x)
    f_div_c = jax.nn.softmax(f, axis=-1)
    y = jnp.einsum("nqk,nkc->nqc", f_div_c, g_x)                           # (N, HW, Ci)
    y = y.transpose(0, 2, 1)                                               # (N, Ci, HW)
    wy = jnp.einsum("nci,co->noi", y, params["wz"]) + params["bz"].reshape(1, -1, 1)
    inv_std = 1.0 / jnp.sqrt(params["running_var"].reshape(1, -1, 1) + BN_EPS)
    wy = (wy - params["running_mean"].reshape(1, -1, 1)) * (
        params["gamma"].reshape(1, -1, 1) * inv_std) + params["beta"].reshape(1, -1, 1)
    return (wy + x_flat).reshape(n, c, h, w)


def make_params(key, c, ci):
    ks = jax.random.split(key, 8)
    def wmk(k, shape, scale=0.2):
        return scale * jax.random.normal(k, shape, dtype=jnp.float32)
    return {
        # 1x1 conv weights stored pre-transposed as (Cin, Cout); torch shape is
        # (Cout, Cin, 1, 1).
        "wg": wmk(ks[0], (c, ci)), "bg": wmk(ks[1], (1, ci), 0.05),
        "wt": wmk(ks[2], (c, ci)), "bt": wmk(ks[3], (1, ci), 0.05),
        "wp": wmk(ks[4], (c, ci)), "bp": wmk(ks[5], (1, ci), 0.05),
        "wz": wmk(ks[6], (ci, c)), "bz": wmk(ks[7], (1, c), 0.05),
        # BatchNorm2d(C) inference params (the module zero-inits gamma/beta
        # which would make z == x trivially; non-zero values exercise the path).
        "gamma": jnp.full((1, c), 0.5, jnp.float32),
        "beta": jnp.full((1, c), 0.1, jnp.float32),
        "running_mean": jnp.zeros((1, c), jnp.float32),
        "running_var": jnp.ones((1, c), jnp.float32),
    }


if __name__ == "__main__":
    N, C, H, W = 2, 4, 16, 16
    CI = C // 2  # inter_channels = in_channels // 2

    key = jax.random.PRNGKey(0)
    kx, kp = jax.random.split(key)
    x = jax.random.normal(kx, (N, C, H, W), dtype=jnp.float32)
    params = make_params(kp, C, CI)

    # tq=tk=128 with HW=256 gives a (2, 2, 2) grid and exercises the multi-step
    # online-softmax path; the default picker would choose 256 tiles.
    fwd = jax.jit(functools.partial(nl_block_forward, tq=128, tk=128))
    z = jax.block_until_ready(fwd(x, params))

    z_ref = nl_block_reference(x, params)
    assert z.shape == (N, C, H, W) and z.dtype == jnp.float32
    # Tolerance relaxed vs. pure f32: theta/phi/g/W_z use bf16 MXU operands
    # (f32 accumulation) and the softmax normalization uses approx reciprocal.
    np.testing.assert_allclose(np.asarray(z), np.asarray(z_ref),
                               rtol=1e-2, atol=1e-2)
    print("KERNEL_OK")
</pallas_src>

<mosaic_0001>
module attributes {stable_mosaic.version = 11 : i64} {
  func.func @_nl_flash_kernel(%arg0: i32, %arg1: i32, %arg2: i32, %arg3: memref<1x128x2xbf16, #tpu.memory_space<vmem>>, %arg4: memref<1x128x2xbf16, #tpu.memory_space<vmem>>, %arg5: memref<1x128x2xbf16, #tpu.memory_space<vmem>>, %arg6: memref<1x128x4xf32, #tpu.memory_space<vmem>>, %arg7: memref<2x4xbf16, #tpu.memory_space<vmem>>, %arg8: memref<1x4xf32, #tpu.memory_space<vmem>>, %arg9: memref<1x128x4xf32, #tpu.memory_space<vmem>>, %arg10: memref<128x1xf32, #tpu.memory_space<vmem>>, %arg11: memref<128x1xf32, #tpu.memory_space<vmem>>, %arg12: memref<128x2xf32, #tpu.memory_space<vmem>>) attributes {dimension_semantics = [#tpu.dimension_semantics<parallel>, #tpu.dimension_semantics<parallel>, #tpu.dimension_semantics<arbitrary>], iteration_bounds = array<i64: 2, 2, 2>, scalar_prefetch = 0 : i64, scratch_operands = 3 : i64, tpu.core_type = #tpu.core_type<tc>, window_params = [{transform_indices = @transform_0, window_bounds = array<i64: 1, 128, 2>}, {transform_indices = @transform_1, window_bounds = array<i64: 1, 128, 2>}, {transform_indices = @transform_2, window_bounds = array<i64: 1, 128, 2>}, {transform_indices = @transform_3, window_bounds = array<i64: 1, 128, 4>}, {pipeline_mode = #tpu.pipeline_mode<synchronous>, transform_indices = @transform_4, window_bounds = array<i64: 2, 4>}, {pipeline_mode = #tpu.pipeline_mode<synchronous>, transform_indices = @transform_5, window_bounds = array<i64: 1, 4>}, {transform_indices = @transform_6, window_bounds = array<i64: 1, 128, 4>}]} {
    %c0_i32 = arith.constant 0 : i32
    %0 = arith.cmpi eq, %arg2, %c0_i32 : i32
    %1 = arith.extui %0 : i1 to i32
    %c0_i32_0 = arith.constant 0 : i32
    %2 = arith.cmpi ne, %1, %c0_i32_0 : i32
    scf.if %2 {
      %cst_25 = arith.constant 0xFF800000 : f32
      %36 = vector.broadcast %cst_25 : f32 to vector<128x1xf32>
      %c0_26 = arith.constant 0 : index
      %c0_27 = arith.constant 0 : index
      %37 = vector.load %arg10[%c0_26, %c0_27] : memref<128x1xf32, #tpu.memory_space<vmem>>, vector<128x1xf32>
      tpu.vector_store %arg10[%c0_26, %c0_27], %36 {strides = array<i32>} : memref<128x1xf32, #tpu.memory_space<vmem>>, vector<128x1xf32>,
      %cst_28 = arith.constant 0.000000e+00 : f32
      %38 = vector.broadcast %cst_28 : f32 to vector<128x1xf32>
      %c0_29 = arith.constant 0 : index
      %c0_30 = arith.constant 0 : index
      %39 = vector.load %arg11[%c0_29, %c0_30] : memref<128x1xf32, #tpu.memory_space<vmem>>, vector<128x1xf32>
      tpu.vector_store %arg11[%c0_29, %c0_30], %38 {strides = array<i32>} : memref<128x1xf32, #tpu.memory_space<vmem>>, vector<128x1xf32>,
      %cst_31 = arith.constant 0.000000e+00 : f32
      %40 = vector.broadcast %cst_31 : f32 to vector<128x2xf32>
      %c0_32 = arith.constant 0 : index
      %c0_33 = arith.constant 0 : index
      %41 = vector.load %arg12[%c0_32, %c0_33] : memref<128x2xf32, #tpu.memory_space<vmem>>, vector<128x2xf32>
      tpu.vector_store %arg12[%c0_32, %c0_33], %40 {strides = array<i32>} : memref<128x2xf32, #tpu.memory_space<vmem>>, vector<128x2xf32>,
    } else {
    }
    %c0 = arith.constant 0 : index
    %c0_1 = arith.constant 0 : index
    %c0_2 = arith.constant 0 : index
    %3 = vector.load %arg3[%c0, %c0_1, %c0_2] : memref<1x128x2xbf16, #tpu.memory_space<vmem>>, vector<1x128x2xbf16>
    %4 = vector.shape_cast %3 : vector<1x128x2xbf16> to vector<128x2xbf16>
    %c0_3 = arith.constant 0 : index
    %c0_4 = arith.constant 0 : index
    %c0_5 = arith.constant 0 : index
    %5 = vector.load %arg4[%c0_3, %c0_4, %c0_5] : memref<1x128x2xbf16, #tpu.memory_space<vmem>>, vector<1x128x2xbf16>
    %6 = vector.shape_cast %5 : vector<1x128x2xbf16> to vector<128x2xbf16>
    %cst = arith.constant dense<0.000000e+00> : vector<128x128xf32>
    %7 = tpu.matmul %4, %6, %cst {dimension_numbers = #tpu.dot_dimension_numbers<[1], [1], [0], [0], [0, 0, 1, 0], [], []>} : vector<128x2xbf16>, vector<128x2xbf16>, vector<128x128xf32> -> vector<128x128xf32>
    %c0_6 = arith.constant 0 : index
    %c0_7 = arith.constant 0 : index
    %8 = vector.load %arg10[%c0_6, %c0_7] : memref<128x1xf32, #tpu.memory_space<vmem>>, vector<128x1xf32>
    %cst_8 = arith.constant dense<0xFF800000> : vector<128xf32>
    %9 = vector.multi_reduction <maximumf>, %7, %cst_8 [1] : vector<128x128xf32> to vector<128xf32>
    %10 = vector.shape_cast %9 : vector<128xf32> to vector<128x1xf32>
    %11 = arith.maximumf %8, %10 : vector<128x1xf32>
    %12 = arith.subf %8, %11 : vector<128x1xf32>
    %13 = math.exp %12 : vector<128x1xf32>
    %14 = vector.broadcast %11 : vector<128x1xf32> to vector<128x128xf32>
    %15 = arith.subf %7, %14 : vector<128x128xf32>
    %16 = math.exp %15 : vector<128x128xf32>
    %c0_9 = arith.constant 0 : index
    %c0_10 = arith.constant 0 : index
    %17 = vector.load %arg11[%c0_9, %c0_10] : memref<128x1xf32, #tpu.memory_space<vmem>>, vector<128x1xf32>
    %18 = arith.mulf %13, %17 : vector<128x1xf32>
    %cst_11 = arith.constant dense<0.000000e+00> : vector<128xf32>
    %19 = vector.multi_reduction <add>, %16, %cst_11 [1] : vector<128x128xf32> to vector<128xf32>
    %20 = vector.shape_cast %19 : vector<128xf32> to vector<128x1xf32>
    %21 = arith.addf %18, %20 : vector<128x1xf32>
    %c0_12 = arith.constant 0 : index
    %c0_13 = arith.constant 0 : index
    %22 = vector.load %arg11[%c0_12, %c0_13] : memref<128x1xf32, #tpu.memory_space<vmem>>, vector<128x1xf32>
    tpu.vector_store %arg11[%c0_12, %c0_13], %21 {strides = array<i32>} : memref<128x1xf32, #tpu.memory_space<vmem>>, vector<128x1xf32>,
    %c0_14 = arith.constant 0 : index
    %c0_15 = arith.constant 0 : index
    %23 = vector.load %arg12[%c0_14, %c0_15] : memref<128x2xf32, #tpu.memory_space<vmem>>, vector<128x2xf32>
    %24 = vector.broadcast %13 : vector<128x1xf32> to vector<128x2xf32>
    %25 = arith.mulf %24, %23 : vector<128x2xf32>
    %26 = arith.truncf %16 : vector<128x128xf32> to vector<128x128xbf16>
    %c0_16 = arith.constant 0 : index
    %c0_17 = arith.constant 0 : index
    %c0_18 = arith.constant 0 : index
    %27 = vector.load %arg5[%c0_16, %c0_17, %c0_18] : memref<1x128x2xbf16, #tpu.memory_space<vmem>>, vector<1x128x2xbf16>
    %28 = vector.shape_cast %27 : vector<1x128x2xbf16> to vector<128x2xbf16>
    %cst_19 = arith.constant dense<0.000000e+00> : vector<128x2xf32>
    %29 = tpu.matmul %26, %28, %cst_19 {dimension_numbers = #tpu.dot_dimension_numbers<[1], [0], [0], [1], [0, 0, 1, 1], [], []>} : vector<128x128xbf16>, vector<128x2xbf16>, vector<128x2xf32> -> vector<128x2xf32>
    %30 = arith.addf %25, %29 : vector<128x2xf32>
    %c0_20 = arith.constant 0 : index
    %c0_21 = arith.constant 0 : index
    %31 = vector.load %arg12[%c0_20, %c0_21] : memref<128x2xf32, #tpu.memory_space<vmem>>, vector<128x2xf32>
    tpu.vector_store %arg12[%c0_20, %c0_21], %30 {strides = array<i32>} : memref<128x2xf32, #tpu.memory_space<vmem>>, vector<128x2xf32>,
    %c0_22 = arith.constant 0 : index
    %c0_23 = arith.constant 0 : index
    %32 = vector.load %arg10[%c0_22, %c0_23] : memref<128x1xf32, #tpu.memory_space<vmem>>, vector<128x1xf32>
    tpu.vector_store %arg10[%c0_22, %c0_23], %11 {strides = array<i32>} : memref<128x1xf32, #tpu.memory_space<vmem>>, vector<128x1xf32>,
    %c1_i32 = arith.constant 1 : i32
    %33 = arith.cmpi eq, %arg2, %c1_i32 : i32
    %34 = arith.extui %33 : i1 to i32
    %c0_i32_24 = arith.constant 0 : i32
    %35 = arith.cmpi ne, %34, %c0_i32_24 : i32
    scf.if %35 {
      %c0_25 = arith.constant 0 : index
      %c0_26 = arith.constant 0 : index
      %36 = vector.load %arg12[%c0_25, %c0_26] : memref<128x2xf32, #tpu.memory_space<vmem>>, vector<128x2xf32>
      %c0_27 = arith.constant 0 : index
      %c0_28 = arith.constant 0 : index
      %37 = vector.load %arg11[%c0_27, %c0_28] : memref<128x1xf32, #tpu.memory_space<vmem>>, vector<128x1xf32>
      %38 = tpu.reciprocal %37 {approx = true} : vector<128x1xf32> -> vector<128x1xf32>
      %39 = vector.broadcast %38 : vector<128x1xf32> to vector<128x2xf32>
      %40 = arith.mulf %36, %39 : vector<128x2xf32>
      %41 = arith.truncf %40 : vector<128x2xf32> to vector<128x2xbf16>
      %c0_29 = arith.constant 0 : index
      %c0_30 = arith.constant 0 : index
      %42 = vector.load %arg7[%c0_29, %c0_30] : memref<2x4xbf16, #tpu.memory_space<vmem>>, vector<2x4xbf16>
      %cst_31 = arith.constant dense<0.000000e+00> : vector<128x4xf32>
      %43 = tpu.matmul %41, %42, %cst_31 {dimension_numbers = #tpu.dot_dimension_numbers<[1], [0], [0], [1], [0, 0, 1, 1], [], []>} : vector<128x2xbf16>, vector<2x4xbf16>, vector<128x4xf32> -> vector<128x4xf32>
      %c0_32 = arith.constant 0 : index
      %c0_33 = arith.constant 0 : index
      %44 = vector.load %arg8[%c0_32, %c0_33] : memref<1x4xf32, #tpu.memory_space<vmem>>, vector<1x4xf32>
      %45 = vector.broadcast %44 : vector<1x4xf32> to vector<128x4xf32>
      %46 = arith.addf %43, %45 : vector<128x4xf32>
      %c0_34 = arith.constant 0 : index
      %c0_35 = arith.constant 0 : index
      %c0_36 = arith.constant 0 : index
      %47 = vector.load %arg6[%c0_34, %c0_35, %c0_36] : memref<1x128x4xf32, #tpu.memory_space<vmem>>, vector<1x128x4xf32>
      %48 = vector.shape_cast %47 : vector<1x128x4xf32> to vector<128x4xf32>
      %49 = arith.addf %46, %48 : vector<128x4xf32>
      %c0_37 = arith.constant 0 : index
      %c0_38 = arith.constant 0 : index
      %c0_39 = arith.constant 0 : index
      %50 = vector.load %arg9[%c0_37, %c0_38, %c0_39] : memref<1x128x4xf32, #tpu.memory_space<vmem>>, vector<1x128x4xf32>
      %51 = vector.shape_cast %50 : vector<1x128x4xf32> to vector<128x4xf32>
      %52 = vector.shape_cast %49 : vector<128x4xf32> to vector<1x128x4xf32>
      tpu.vector_store %arg9[%c0_37, %c0_38, %c0_39], %52 {strides = array<i32>} : memref<1x128x4xf32, #tpu.memory_space<vmem>>, vector<1x128x4xf32>,
    } else {
    }
    return
  }
  func.func @transform_0(%arg0: i32, %arg1: i32, %arg2: i32) -> (i32, i32, i32) {
    %c0_i32 = arith.constant 0 : i32
    %c0_i32_0 = arith.constant 0 : i32
    return %arg0, %arg1, %c0_i32 : i32, i32, i32
  }
  func.func @transform_1(%arg0: i32, %arg1: i32, %arg2: i32) -> (i32, i32, i32) {
    %c0_i32 = arith.constant 0 : i32
    %c0_i32_0 = arith.constant 0 : i32
    return %arg0, %arg2, %c0_i32 : i32, i32, i32
  }
  func.func @transform_2(%arg0: i32, %arg1: i32, %arg2: i32) -> (i32, i32, i32) {
    %c0_i32 = arith.constant 0 : i32
    %c0_i32_0 = arith.constant 0 : i32
    return %arg0, %arg2, %c0_i32 : i32, i32, i32
  }
  func.func @transform_3(%arg0: i32, %arg1: i32, %arg2: i32) -> (i32, i32, i32) {
    %c0_i32 = arith.constant 0 : i32
    %c0_i32_0 = arith.constant 0 : i32
    return %arg0, %arg1, %c0_i32 : i32, i32, i32
  }
  func.func @transform_4(%arg0: i32, %arg1: i32, %arg2: i32) -> (i32, i32) {
    %c0_i32 = arith.constant 0 : i32
    %c0_i32_0 = arith.constant 0 : i32
    %c0_i32_1 = arith.constant 0 : i32
    return %c0_i32, %c0_i32_0 : i32, i32
  }
  func.func @transform_5(%arg0: i32, %arg1: i32, %arg2: i32) -> (i32, i32) {
    %c0_i32 = arith.constant 0 : i32
    %c0_i32_0 = arith.constant 0 : i32
    %c0_i32_1 = arith.constant 0 : i32
    return %c0_i32, %c0_i32_0 : i32, i32
  }
  func.func @transform_6(%arg0: i32, %arg1: i32, %arg2: i32) -> (i32, i32, i32) {
    %c0_i32 = arith.constant 0 : i32
    %c0_i32_0 = arith.constant 0 : i32
    return %arg0, %arg1, %c0_i32 : i32, i32, i32
  }
}

module attributes {stable_mosaic.version = 11 : i64} {
  func.func @_proj_kernel(%arg0: i32, %arg1: i32, %arg2: memref<1x256x4xf32, #tpu.memory_space<vmem>>, %arg3: memref<4x2xf32, #tpu.memory_space<vmem>>, %arg4: memref<1x2xf32, #tpu.memory_space<vmem>>, %arg5: memref<4x2xf32, #tpu.memory_space<vmem>>, %arg6: memref<1x2xf32, #tpu.memory_space<vmem>>, %arg7: memref<4x2xf32, #tpu.memory_space<vmem>>, %arg8: memref<1x2xf32, #tpu.memory_space<vmem>>, %arg9: memref<1x256x2xbf16, #tpu.memory_space<vmem>>, %arg10: memref<1x256x2xbf16, #tpu.memory_space<vmem>>, %arg11: memref<1x256x2xbf16, #tpu.memory_space<vmem>>) attributes {dimension_semantics = [#tpu.dimension_semantics<parallel>, #tpu.dimension_semantics<parallel>], iteration_bounds = array<i64: 2, 1>, scalar_prefetch = 0 : i64, scratch_operands = 0 : i64, tpu.core_type = #tpu.core_type<tc>, window_params = [{transform_indices = @transform_0, window_bounds = array<i64: 1, 256, 4>}, {pipeline_mode = #tpu.pipeline_mode<synchronous>, transform_indices = @transform_1, window_bounds = array<i64: 4, 2>}, {pipeline_mode = #tpu.pipeline_mode<synchronous>, transform_indices = @transform_2, window_bounds = array<i64: 1, 2>}, {pipeline_mode = #tpu.pipeline_mode<synchronous>, transform_indices = @transform_3, window_bounds = array<i64: 4, 2>}, {pipeline_mode = #tpu.pipeline_mode<synchronous>, transform_indices = @transform_4, window_bounds = array<i64: 1, 2>}, {pipeline_mode = #tpu.pipeline_mode<synchronous>, transform_indices = @transform_5, window_bounds = array<i64: 4, 2>}, {pipeline_mode = #tpu.pipeline_mode<synchronous>, transform_indices = @transform_6, window_bounds = array<i64: 1, 2>}, {transform_indices = @transform_7, window_bounds = array<i64: 1, 256, 2>}, {transform_indices = @transform_8, window_bounds = array<i64: 1, 256, 2>}, {transform_indices = @transform_9, window_bounds = array<i64: 1, 256, 2>}]} {
    %c0 = arith.constant 0 : index
    %c0_0 = arith.constant 0 : index
    %c0_1 = arith.constant 0 : index
    %0 = vector.load %arg2[%c0, %c0_0, %c0_1] : memref<1x256x4xf32, #tpu.memory_space<vmem>>, vector<1x256x4xf32>
    %1 = vector.shape_cast %0 : vector<1x256x4xf32> to vector<256x4xf32>
    %c0_2 = arith.constant 0 : index
    %c0_3 = arith.constant 0 : index
    %2 = vector.load %arg3[%c0_2, %c0_3] : memref<4x2xf32, #tpu.memory_space<vmem>>, vector<4x2xf32>
    %cst = arith.constant dense<0.000000e+00> : vector<256x2xf32>
    %3 = tpu.matmul %1, %2, %cst {dimension_numbers = #tpu.dot_dimension_numbers<[1], [0], [0], [1], [0, 0, 1, 1], [], []>} : vector<256x4xf32>, vector<4x2xf32>, vector<256x2xf32> -> vector<256x2xf32>
    %c0_4 = arith.constant 0 : index
    %c0_5 = arith.constant 0 : index
    %4 = vector.load %arg4[%c0_4, %c0_5] : memref<1x2xf32, #tpu.memory_space<vmem>>, vector<1x2xf32>
    %5 = vector.broadcast %4 : vector<1x2xf32> to vector<256x2xf32>
    %6 = arith.addf %3, %5 : vector<256x2xf32>
    %7 = arith.truncf %6 : vector<256x2xf32> to vector<256x2xbf16>
    %c0_6 = arith.constant 0 : index
    %c0_7 = arith.constant 0 : index
    %c0_8 = arith.constant 0 : index
    %8 = vector.load %arg9[%c0_6, %c0_7, %c0_8] : memref<1x256x2xbf16, #tpu.memory_space<vmem>>, vector<1x256x2xbf16>
    %9 = vector.shape_cast %8 : vector<1x256x2xbf16> to vector<256x2xbf16>
    %10 = vector.shape_cast %7 : vector<256x2xbf16> to vector<1x256x2xbf16>
    tpu.vector_store %arg9[%c0_6, %c0_7, %c0_8], %10 {strides = array<i32>} : memref<1x256x2xbf16, #tpu.memory_space<vmem>>, vector<1x256x2xbf16>,
    %c0_9 = arith.constant 0 : index
    %c0_10 = arith.constant 0 : index
    %11 = vector.load %arg5[%c0_9, %c0_10] : memref<4x2xf32, #tpu.memory_space<vmem>>, vector<4x2xf32>
    %cst_11 = arith.constant dense<0.000000e+00> : vector<256x2xf32>
    %12 = tpu.matmul %1, %11, %cst_11 {dimension_numbers = #tpu.dot_dimension_numbers<[1], [0], [0], [1], [0, 0, 1, 1], [], []>} : vector<256x4xf32>, vector<4x2xf32>, vector<256x2xf32> -> vector<256x2xf32>
    %c0_12 = arith.constant 0 : index
    %c0_13 = arith.constant 0 : index
    %13 = vector.load %arg6[%c0_12, %c0_13] : memref<1x2xf32, #tpu.memory_space<vmem>>, vector<1x2xf32>
    %14 = vector.broadcast %13 : vector<1x2xf32> to vector<256x2xf32>
    %15 = arith.addf %12, %14 : vector<256x2xf32>
    %16 = arith.truncf %15 : vector<256x2xf32> to vector<256x2xbf16>
    %c0_14 = arith.constant 0 : index
    %c0_15 = arith.constant 0 : index
    %c0_16 = arith.constant 0 : index
    %17 = vector.load %arg10[%c0_14, %c0_15, %c0_16] : memref<1x256x2xbf16, #tpu.memory_space<vmem>>, vector<1x256x2xbf16>
    %18 = vector.shape_cast %17 : vector<1x256x2xbf16> to vector<256x2xbf16>
    %19 = vector.shape_cast %16 : vector<256x2xbf16> to vector<1x256x2xbf16>
    tpu.vector_store %arg10[%c0_14, %c0_15, %c0_16], %19 {strides = array<i32>} : memref<1x256x2xbf16, #tpu.memory_space<vmem>>, vector<1x256x2xbf16>,
    %c0_17 = arith.constant 0 : index
    %c0_18 = arith.constant 0 : index
    %20 = vector.load %arg7[%c0_17, %c0_18] : memref<4x2xf32, #tpu.memory_space<vmem>>, vector<4x2xf32>
    %cst_19 = arith.constant dense<0.000000e+00> : vector<256x2xf32>
    %21 = tpu.matmul %1, %20, %cst_19 {dimension_numbers = #tpu.dot_dimension_numbers<[1], [0], [0], [1], [0, 0, 1, 1], [], []>} : vector<256x4xf32>, vector<4x2xf32>, vector<256x2xf32> -> vector<256x2xf32>
    %c0_20 = arith.constant 0 : index
    %c0_21 = arith.constant 0 : index
    %22 = vector.load %arg8[%c0_20, %c0_21] : memref<1x2xf32, #tpu.memory_space<vmem>>, vector<1x2xf32>
    %23 = vector.broadcast %22 : vector<1x2xf32> to vector<256x2xf32>
    %24 = arith.addf %21, %23 : vector<256x2xf32>
    %25 = arith.truncf %24 : vector<256x2xf32> to vector<256x2xbf16>
    %c0_22 = arith.constant 0 : index
    %c0_23 = arith.constant 0 : index
    %c0_24 = arith.constant 0 : index
    %26 = vector.load %arg11[%c0_22, %c0_23, %c0_24] : memref<1x256x2xbf16, #tpu.memory_space<vmem>>, vector<1x256x2xbf16>
    %27 = vector.shape_cast %26 : vector<1x256x2xbf16> to vector<256x2xbf16>
    %28 = vector.shape_cast %25 : vector<256x2xbf16> to vector<1x256x2xbf16>
    tpu.vector_store %arg11[%c0_22, %c0_23, %c0_24], %28 {strides = array<i32>} : memref<1x256x2xbf16, #tpu.memory_space<vmem>>, vector<1x256x2xbf16>,
    return
  }
  func.func @transform_0(%arg0: i32, %arg1: i32) -> (i32, i32, i32) {
    %c0_i32 = arith.constant 0 : i32
    %c0_i32_0 = arith.constant 0 : i32
    return %arg0, %arg1, %c0_i32 : i32, i32, i32
  }
  func.func @transform_1(%arg0: i32, %arg1: i32) -> (i32, i32) {
    %c0_i32 = arith.constant 0 : i32
    %c0_i32_0 = arith.constant 0 : i32
    %c0_i32_1 = arith.constant 0 : i32
    return %c0_i32, %c0_i32_0 : i32, i32
  }
  func.func @transform_2(%arg0: i32, %arg1: i32) -> (i32, i32) {
    %c0_i32 = arith.constant 0 : i32
    %c0_i32_0 = arith.constant 0 : i32
    %c0_i32_1 = arith.constant 0 : i32
    return %c0_i32, %c0_i32_0 : i32, i32
  }
  func.func @transform_3(%arg0: i32, %arg1: i32) -> (i32, i32) {
    %c0_i32 = arith.constant 0 : i32
    %c0_i32_0 = arith.constant 0 : i32
    %c0_i32_1 = arith.constant 0 : i32
    return %c0_i32, %c0_i32_0 : i32, i32
  }
  func.func @transform_4(%arg0: i32, %arg1: i32) -> (i32, i32) {
    %c0_i32 = arith.constant 0 : i32
    %c0_i32_0 = arith.constant 0 : i32
    %c0_i32_1 = arith.constant 0 : i32
    return %c0_i32, %c0_i32_0 : i32, i32
  }
  func.func @transform_5(%arg0: i32, %arg1: i32) -> (i32, i32) {
    %c0_i32 = arith.constant 0 : i32
    %c0_i32_0 = arith.constant 0 : i32
    %c0_i32_1 = arith.constant 0 : i32
    return %c0_i32, %c0_i32_0 : i32, i32
  }
  func.func @transform_6(%arg0: i32, %arg1: i32) -> (i32, i32) {
    %c0_i32 = arith.constant 0 : i32
    %c0_i32_0 = arith.constant 0 : i32
    %c0_i32_1 = arith.constant 0 : i32
    return %c0_i32, %c0_i32_0 : i32, i32
  }
  func.func @transform_7(%arg0: i32, %arg1: i32) -> (i32, i32, i32) {
    %c0_i32 = arith.constant 0 : i32
    %c0_i32_0 = arith.constant 0 : i32
    return %arg0, %arg1, %c0_i32 : i32, i32, i32
  }
  func.func @transform_8(%arg0: i32, %arg1: i32) -> (i32, i32, i32) {
    %c0_i32 = arith.constant 0 : i32
    %c0_i32_0 = arith.constant 0 : i32
    return %arg0, %arg1, %c0_i32 : i32, i32, i32
  }
  func.func @transform_9(%arg0: i32, %arg1: i32) -> (i32, i32, i32) {
    %c0_i32 = arith.constant 0 : i32
    %c0_i32_0 = arith.constant 0 : i32
    return %arg0, %arg1, %c0_i32 : i32, i32, i32
  }
}

</mosaic_0001>

<bundles_post_ra>
// kernel: nl_block_forward.3
= control target key start
LH: loop header
LB: loop body
LE: loop exit
PB: predicated region body
PF: predicated region fallthrough
CT: control target
= control target key end

     0   :  { %s2352_s21 = smov 0   ;;  %s2354_s22 = smov 0   ;;  %s2980_s0 = inlined_call_operand.vmem [shape: bf16[2,256,2], index: 0, kind: input, shape index: {}]   ;;  %s2981_s1 = inlined_call_operand.vmem [shape: bf16[2,256,2], index: 1, kind: input, shape index: {}]   ;;  %s2982_s2 = inlined_call_operand.vmem [shape: bf16[2,256,2], index: 2, kind: input, shape index: {}]   ;;  %s2983_s3 = inlined_call_operand.vmem [shape: f32[2,256,4], index: 3, kind: input, shape index: {}]   ;;  %s2984_s4 = inlined_call_operand.vmem [shape: bf16[2,4], index: 4, kind: input, shape index: {}]   ;;  %s2985_s5 = inlined_call_operand.vmem [shape: f32[1,4], index: 5, kind: input, shape index: {}]   ;;  %s2986_s6 = inlined_call_operand.vmem [shape: f32[2,256,4], index: 6, kind: output, shape index: {}]  }
   0x1   :  { %s2356_s23 = smov 0   ;;  %s2358_s24 = smov 0  }
   0x2   :  { %s2360_s25 = smov 0   ;;  %s2362_s26 = smov 0  }
   0x3   :  { %s2364_s27 = smov 0  }
   0x4 LB: > { %s28_s28 = sadd.s32 1, %s2299_s24  ;;  %s31_s29 = sadd.s32 1, %s2303_s25  ;;  %s2311_s27 = sphi %s2364_s27, %s16_s27   ;;  %s2307_s26 = sphi %s2362_s26, %s2996_s26   ;;  %s2303_s25 = sphi %s2360_s25, %s2995_s25   ;;  %s2299_s24 = sphi %s2358_s24, %s2994_s24   ;;  %s2295_s23 = sphi %s2356_s23, %s2993_s23   ;;  %s2291_s22 = sphi %s2354_s22, %s2992_s22   ;;  %s2287_s21 = sphi %s2352_s21, %s2991_s21  }
   0x5   : > { %p29_p0 = scmp.ge.s32.totalorder %s28_s28, 2  ;;  %p1877_p1 = scmp.ge.s32.totalorder %s2311_s27, 1 }
   0x6   : > { %p291_p2 = scmp.lt.s32.totalorder %s2311_s27, 9  ;;  %s35_s30 = sadd.s32 1, %s2307_s26 }
   0x7   : > { %s2998_s28 = smov (%p29_p0, %s28_s28), 0  ;;  %s3000_s29 = smov (!%p29_p0, %s31_s29), %s2303_s25 }
   0x8   : > { %p292_p3 = pnand %p1877_p1, %p291_p2  ;;  %p33_p4 = scmp.ge.s32.totalorder %s3000_s29, 2 }
   0x9   : > { %s1878_s7 = sshll.u32 (!%p292_p3), %s2291_s22, 4  ;;  %p357_p6 = scmp.lt.s32.totalorder (!%p292_p3), %s2295_s23, 1 }
   0xa   : > { %s3002_s29 = smov (%p33_p4, %s3000_s29), 0  ;;  %s3004_s30 = smov (!%p33_p4, %s35_s30), %s2307_s26 }
   0xb   : > { %2987 = sst [smem:[#allocation5_spill]] %s3002_s29  ;;  %p37_p5 = scmp.ge.s32.totalorder %s3004_s30, 2 }
   0xc   : > { %295 = sbr.rel (%p292_p3) target bundleno = 1224 (0x4c8), region = 44  ;;  %p359_p7 = scmp.lt.s32.totalorder (!%p292_p3), %s1878_s7, 31 }
   0xd   : > { %s3006_s30 = smov (%p37_p5, %s3004_s30), 0  ;;  %s1881_s8 = sshll.u32 (!%p292_p3), %s2287_s21, 4 }
   0xe   : > { %2988 = sst [smem:[#allocation6_spill]] %s3006_s30  ;;  %p369_p8 = scmp.lt.s32.totalorder (!%p292_p3), %s1881_s8, 31 }
   0xf   : > { %p1893_p9 = scmp.ne.s32.totalorder (!%p292_p3), %s2287_s21, 0 }
  0x13   : > { %s3008_s23 = smov (!%p357_p6, %s2295_s23), 1  ;;  %s3010_s7 = smov (!%p359_p7, %s1878_s7), 31 }
  0x14   : > { %s1879_s9 = sshll.u32 %s3008_s23, 5  ;;  %s3012_s8 = smov (!%p369_p8, %s1881_s8), 31  ;;  %vm411_vm0 = vcmask (!%p1893_p9), 7168   ;;  %vm444_vm1 = vcmask (!%p1893_p9), 15360   ;;  %v2313_v0 = vmov (!%p1893_p9), -inf   ;;  %v2314_v1 = vmov (!%p1893_p9), 0.0  }
  0x15   : > { %s362_s10 = sadd.s32 %s1879_s9, %s3010_s7  ;;  %s372_s23 = sadd.s32 %s1879_s9, %s3012_s8  ;;  %412 = vst.msk [vmem:[#allocation2] sm:$0xff] (!%p1893_p9), %vm411_vm0, %v2313_v0  ;;  %413 = vst.msk [vmem:[#allocation2 + $0x8] sm:$0xff] (!%p1893_p9), %vm411_vm0, %v2313_v0 }
  0x16   : > { %s1880_s11 = sshll.u32 %s362_s10, 2  ;;  %s1889_s12 = sshll.u32 %s362_s10, 3  ;;  %414 = vst.msk [vmem:[#allocation2 + $0x10] sm:$0xff] (!%p1893_p9), %vm411_vm0, %v2313_v0  ;;  %415 = vst.msk [vmem:[#allocation2 + $0x18] sm:$0xff] (!%p1893_p9), %vm411_vm0, %v2313_v0 }
  0x17   : > { %s2400_s15 = scalar_lea.vmem %s2980_s0, %s1880_s11  ;;  %s2405_s18 = scalar_lea.vmem %s2983_s3, %s1889_s12  ;;  %416 = vst.msk [vmem:[#allocation2 + $0x20] sm:$0xff] (!%p1893_p9), %vm411_vm0, %v2313_v0  ;;  %417 = vst.msk [vmem:[#allocation2 + $0x28] sm:$0xff] (!%p1893_p9), %vm411_vm0, %v2313_v0 }
  0x18   : > { %s2410_s22 = scalar_lea.vmem %s2986_s6, %s1889_s12  ;;  %s1883_s7 = sshll.u32 %s372_s23, 2  ;;  %418 = vst.msk [vmem:[#allocation2 + $0x30] sm:$0xff] (!%p1893_p9), %vm411_vm0, %v2313_v0  ;;  %419 = vst.msk [vmem:[#allocation2 + $0x38] sm:$0xff] (!%p1893_p9), %vm411_vm0, %v2313_v0 }
  0x19   : > { %s2415_s29 = scalar_lea.vmem %s2981_s1, %s1883_s7  ;;  %s2420_s14 = scalar_lea.vmem %s2982_s2, %s1883_s7  ;;  %420 = vst.msk [vmem:[#allocation2 + $0x40] sm:$0xff] (!%p1893_p9), %vm411_vm0, %v2313_v0  ;;  %421 = vst.msk [vmem:[#allocation2 + $0x48] sm:$0xff] (!%p1893_p9), %vm411_vm0, %v2313_v0 }
  0x1a   : > { %410 = sbr.rel (%p1893_p9) target bundleno = 45 (0x2d), region = 48  ;;  %422 = vst.msk [vmem:[#allocation2 + $0x50] sm:$0xff] (!%p1893_p9), %vm411_vm0, %v2313_v0  ;;  %423 = vst.msk [vmem:[#allocation2 + $0x58] sm:$0xff] (!%p1893_p9), %vm411_vm0, %v2313_v0 }
  0x1b   : > { %424 = vst.msk [vmem:[#allocation2 + $0x60] sm:$0xff] (!%p1893_p9), %vm411_vm0, %v2313_v0  ;;  %425 = vst.msk [vmem:[#allocation2 + $0x68] sm:$0xff] (!%p1893_p9), %vm411_vm0, %v2313_v0 }
  0x1c   : > { %426 = vst.msk [vmem:[#allocation2 + $0x70] sm:$0xff] (!%p1893_p9), %vm411_vm0, %v2313_v0  ;;  %427 = vst.msk [vmem:[#allocation2 + $0x78] sm:$0xff] (!%p1893_p9), %vm411_vm0, %v2313_v0 }
  0x1d   : > { %428 = vst.msk [vmem:[#allocation3] sm:$0xff] (!%p1893_p9), %vm411_vm0, %v2314_v1  ;;  %429 = vst.msk [vmem:[#allocation3 + $0x8] sm:$0xff] (!%p1893_p9), %vm411_vm0, %v2314_v1 }
  0x1e   : > { %430 = vst.msk [vmem:[#allocation3 + $0x10] sm:$0xff] (!%p1893_p9), %vm411_vm0, %v2314_v1  ;;  %431 = vst.msk [vmem:[#allocation3 + $0x18] sm:$0xff] (!%p1893_p9), %vm411_vm0, %v2314_v1 }
  0x1f   : > { %432 = vst.msk [vmem:[#allocation3 + $0x20] sm:$0xff] (!%p1893_p9), %vm411_vm0, %v2314_v1  ;;  %433 = vst.msk [vmem:[#allocation3 + $0x28] sm:$0xff] (!%p1893_p9), %vm411_vm0, %v2314_v1 }
  0x20   : > { %434 = vst.msk [vmem:[#allocation3 + $0x30] sm:$0xff] (!%p1893_p9), %vm411_vm0, %v2314_v1  ;;  %435 = vst.msk [vmem:[#allocation3 + $0x38] sm:$0xff] (!%p1893_p9), %vm411_vm0, %v2314_v1 }
  0x21   : > { %436 = vst.msk [vmem:[#allocation3 + $0x40] sm:$0xff] %vm411_vm0, %v2314_v1  ;;  %437 = vst.msk [vmem:[#allocation3 + $0x48] sm:$0xff] %vm411_vm0, %v2314_v1 }
  0x22   : > { %438 = vst.msk [vmem:[#allocation3 + $0x50] sm:$0xff] %vm411_vm0, %v2314_v1  ;;  %439 = vst.msk [vmem:[#allocation3 + $0x58] sm:$0xff] %vm411_vm0, %v2314_v1 }
  0x23   : > { %440 = vst.msk [vmem:[#allocation3 + $0x60] sm:$0xff] %vm411_vm0, %v2314_v1  ;;  %441 = vst.msk [vmem:[#allocation3 + $0x68] sm:$0xff] %vm411_vm0, %v2314_v1 }
  0x24   : > { %442 = vst.msk [vmem:[#allocation3 + $0x70] sm:$0xff] %vm411_vm0, %v2314_v1  ;;  %443 = vst.msk [vmem:[#allocation3 + $0x78] sm:$0xff] %vm411_vm0, %v2314_v1 }
  0x25   : > { %445 = vst.msk [vmem:[#allocation4] sm:$0xff] %vm444_vm1, %v2314_v1  ;;  %446 = vst.msk [vmem:[#allocation4 + $0x8] sm:$0xff] %vm444_vm1, %v2314_v1 }
  0x26   : > { %447 = vst.msk [vmem:[#allocation4 + $0x10] sm:$0xff] %vm444_vm1, %v2314_v1  ;;  %448 = vst.msk [vmem:[#allocation4 + $0x18] sm:$0xff] %vm444_vm1, %v2314_v1 }
  0x27   : > { %449 = vst.msk [vmem:[#allocation4 + $0x20] sm:$0xff] %vm444_vm1, %v2314_v1  ;;  %450 = vst.msk [vmem:[#allocation4 + $0x28] sm:$0xff] %vm444_vm1, %v2314_v1 }
  0x28   : > { %451 = vst.msk [vmem:[#allocation4 + $0x30] sm:$0xff] %vm444_vm1, %v2314_v1  ;;  %452 = vst.msk [vmem:[#allocation4 + $0x38] sm:$0xff] %vm444_vm1, %v2314_v1 }
  0x29   : > { %453 = vst.msk [vmem:[#allocation4 + $0x40] sm:$0xff] %vm444_vm1, %v2314_v1  ;;  %454 = vst.msk [vmem:[#allocation4 + $0x48] sm:$0xff] %vm444_vm1, %v2314_v1 }
  0x2a   : > { %455 = vst.msk [vmem:[#allocation4 + $0x50] sm:$0xff] %vm444_vm1, %v2314_v1  ;;  %456 = vst.msk [vmem:[#allocation4 + $0x58] sm:$0xff] %vm444_vm1, %v2314_v1 }
  0x2b   : > { %457 = vst.msk [vmem:[#allocation4 + $0x60] sm:$0xff] %vm444_vm1, %v2314_v1  ;;  %458 = vst.msk [vmem:[#allocation4 + $0x68] sm:$0xff] %vm444_vm1, %v2314_v1 }
  0x2c   : > { %459 = vst.msk [vmem:[#allocation4 + $0x70] sm:$0xff] %vm444_vm1, %v2314_v1  ;;  %460 = vst.msk [vmem:[#allocation4 + $0x78] sm:$0xff] %vm444_vm1, %v2314_v1 }
  0x2d PF: > { %v2135_v2 = vld [vmem:[%s2415_s29] sm:$0xff]   ;;  %vm573_vm2 = vcmask 15360   ;;  %v2136_v3 = vld [vmem:[%s2415_s29 + $0x8] sm:$0xff]   ;;  %v2137_v5 = vld [vmem:[%s2415_s29 + $0x10] sm:$0xff]   ;;  %v2315_v35 = vmov 0   ;;  %vm1039_vm3 = vcmask 7168  }
  0x2e   : > { %2063 = vmatprep.subr.msk.bf16.mxu0 %vm573_vm2, %v2135_v2  ;;  %v599_v4 = vsel %vm573_vm2, %v2135_v2, 0  ;;  %v602_v6 = vsel %vm573_vm2, %v2136_v3, 0  ;;  %v2143_v7 = vld [vmem:[%s2400_s15] sm:$0xff]   ;;  %v605_v8 = vsel %vm573_vm2, %v2137_v5, 0  ;;  %v2138_v9 = vld [vmem:[%s2415_s29 + $0x18] sm:$0xff]   ;;  %v2140_v13 = vld [vmem:[%s2415_s29 + $0x28] sm:$0xff]   ;;  %2134 = vset.pattern.permute.xlu1 %v2315_v35 }
  0x2f   : > { %1980 = vmatpush3.bf16.xpose.msra.mxu0 %v599_v4  ;;  %1995 = vmatprep.mubr.msk.bf16.mxu0 %vm573_vm2, %v2143_v7  ;;  %v608_v10 = vsel %vm573_vm2, %v2138_v9, 0  ;;  %v2139_v11 = vld [vmem:[%s2415_s29 + $0x20] sm:$0xff]   ;;  %v614_v14 = vsel %vm573_vm2, %v2140_v13, 0  ;;  %v2141_v15 = vld [vmem:[%s2415_s29 + $0x30] sm:$0xff]   ;;  %v2142_v17 = vld [vmem:[%s2415_s29 + $0x38] sm:$0xff]   ;;  %p1926_p10 = scmp.ne.s32.totalorder %s2287_s21, 1 }
  0x30   : > { %2064 = vmatprep.subr.msk.bf16.mxu0 %vm573_vm2, %v2136_v3  ;;  %v611_v12 = vsel %vm573_vm2, %v2139_v11, 0  ;;  %v617_v16 = vsel %vm573_vm2, %v2141_v15, 0  ;;  %v620_v18 = vsel %vm573_vm2, %v2142_v17, 0  ;;  %v2144_v19 = vld [vmem:[%s2400_s15 + $0x8] sm:$0xff]   ;;  %v2145_v20 = vld [vmem:[%s2400_s15 + $0x10] sm:$0xff]   ;;  %v2146_v21 = vld [vmem:[%s2400_s15 + $0x18] sm:$0xff]   ;;  %2133 = vset.pattern.permute.xlu0 %v2315_v35 }
  0x31   : > { %v2147_v22 = vld [vmem:[%s2400_s15 + $0x20] sm:$0xff]   ;;  %v2148_v23 = vld [vmem:[%s2400_s15 + $0x28] sm:$0xff]   ;;  %v2149_v24 = vld [vmem:[%s2400_s15 + $0x30] sm:$0xff]   ;;  %vm1573_vm4 = vcmask (!%p1926_p10), 1040384   ;;  %vm1706_vm5 = vcmask (!%p1926_p10), 31744  }
  0x32   : > { %v2150_v25 = vld [vmem:[%s2400_s15 + $0x38] sm:$0xff]   ;;  %v2151_v43 = vld [vmem:[%s2420_s14] sm:$0xff]   ;;  %v2152_v44 = vld [vmem:[%s2420_s14 + $0x8] sm:$0xff]  }
  0x33   : > { %2011 = vmatprep.subr.bf16.mxu1 %v2151_v43  ;;  %v2561_v45 = vld [vmem:[#allocation2 + $0x10] sm:$0xff]  ;;  %v2563_v46 = vld [vmem:[#allocation2] sm:$0xff]  ;;  %v2571_v51 = vld [vmem:[#allocation2 + $0x18] sm:$0xff] }
  0x34   : > { %2012 = vmatpush3.bf16.msra.mxu1 %v2151_v43  ;;  %v2576_v52 = vld [vmem:[#allocation2 + $0x8] sm:$0xff]  ;;  %v2153_v53 = vld [vmem:[%s2420_s14 + $0x10] sm:$0xff]   ;;  %v2591_v58 = vld [vmem:[#allocation2 + $0x20] sm:$0xff] }
  0x35   : > { %2013 = vmatprep.subr.bf16.mxu1 %v2152_v44  ;;  %v2154_v59 = vld [vmem:[%s2420_s14 + $0x18] sm:$0xff]   ;;  %v2605_v1 = vld [vmem:[#allocation2 + $0x30] sm:$0xff]  ;;  %v2155_v2 = vld [vmem:[%s2420_s14 + $0x20] sm:$0xff]  }
  0x36   : > { %v2596_v60 = vld [vmem:[#allocation2 + $0x38] sm:$0xff]  ;;  %v2610_v3 = vld [vmem:[#allocation2 + $0x28] sm:$0xff] }
  0x37   : > { %1982 = vmatpush3.bf16.xpose.msra.mxu0 %v602_v6 }
  0x38   : > { %2065 = vmatprep.subr.msk.bf16.mxu0 %vm573_vm2, %v2137_v5  ;;  %2014 = vmatpush3.bf16.msra.mxu1 %v2152_v44 }
  0x39   : > { %2015 = vmatprep.subr.bf16.mxu1 %v2153_v53 }
  0x3c   : > { %2016 = vmatpush3.bf16.msra.mxu1 %v2153_v53  ;;  %v732_v53 = vld [vmem:[#allocation2 + $0x68] sm:$0xff] }
  0x3d   : > { %2017 = vmatprep.subr.bf16.mxu1 %v2154_v59 }
  0x3f   : > { %1984 = vmatpush3.bf16.xpose.msra.mxu0 %v605_v8  ;;  %v2620_v8 = vld [vmem:[#allocation2 + $0x40] sm:$0xff] }
  0x40   : > { %2066 = vmatprep.subr.msk.bf16.mxu0 %vm573_vm2, %v2138_v9  ;;  %2018 = vmatpush3.bf16.msra.mxu1 %v2154_v59  ;;  %v2156_v9 = vld [vmem:[%s2420_s14 + $0x28] sm:$0xff]  }
  0x41   : > { %2019 = vmatprep.subr.bf16.mxu1 %v2155_v2 }
  0x44   : > { %2020 = vmatpush3.bf16.msra.mxu1 %v2155_v2 }
  0x45   : > { %2021 = vmatprep.subr.bf16.mxu1 %v2156_v9 }
  0x47   : > { %1986 = vmatpush3.bf16.xpose.msra.mxu0 %v608_v10  ;;  %v2626_v10 = vld [vmem:[#allocation2 + $0x58] sm:$0xff] }
  0x48   : > { %2067 = vmatprep.subr.msk.bf16.mxu0 %vm573_vm2, %v2139_v11  ;;  %2022 = vmatpush3.bf16.msra.mxu1 %v2156_v9 }
  0x4f   : > { %1988 = vmatpush3.bf16.xpose.msra.mxu0 %v611_v12 }
  0x50   : > { %2068 = vmatprep.subr.msk.bf16.mxu0 %vm573_vm2, %v2140_v13 }
  0x57   : > { %1990 = vmatpush3.bf16.xpose.msra.mxu0 %v614_v14 }
  0x58   : > { %2069 = vmatprep.subr.msk.bf16.mxu0 %vm573_vm2, %v2141_v15  ;;  %v2636_v15 = vld [vmem:[#allocation2 + $0x50] sm:$0xff] }
  0x5f   : > { %1992 = vmatpush3.bf16.xpose.msra.mxu0 %v617_v16  ;;  %v2157_v16 = vld [vmem:[%s2420_s14 + $0x30] sm:$0xff]  }
  0x60   : > { %2070 = vmatprep.subr.msk.bf16.mxu0 %vm573_vm2, %v2142_v17  ;;  %v2642_v17 = vld [vmem:[#allocation2 + $0x48] sm:$0xff]  ;;  %2023 = vmatprep.subr.bf16.mxu1 %v2157_v16 }
  0x61   : > { %2024 = vmatpush3.bf16.msra.mxu1 %v2157_v16 }
  0x67   : > { %1994 = vmatpush3.bf16.xpose.msra.mxu0 %v620_v18 }
  0x6e   : > { %1996 = vmatmul.mubr.msk.bf16.vlgmr.msra.gmra.mrb[0].mxu0 %vm573_vm2, %v2144_v19 }
  0x6f   : > { %1999 = vmatprep.mubr.msk.bf16.mxu0 %vm573_vm2, %v2145_v20 }
  0x76   : > { %2000 = vmatmul.mubr.msk.bf16.gmra.mrb[4].mxu0 %vm573_vm2, %v2146_v21 }
  0x77   : > { %2003 = vmatprep.mubr.msk.bf16.mxu0 %vm573_vm2, %v2147_v22 }
  0x7e   : > { %2004 = vmatmul.mubr.msk.bf16.gmra.mrb[8].mxu0 %vm573_vm2, %v2148_v23  ;;  %v2654_v23 = vld [vmem:[#allocation2 + $0x60] sm:$0xff] }
  0x7f   : > { %2007 = vmatprep.mubr.msk.bf16.mxu0 %vm573_vm2, %v2149_v24  ;;  %v2158_v24 = vld [vmem:[%s2420_s14 + $0x38] sm:$0xff]  }
  0x80   : > { %2025 = vmatprep.subr.bf16.mxu1 %v2158_v24 }
  0x81   : > { %2026 = vmatpush3.bf16.msra.mxu1 %v2158_v24 }
  0x86   : > { %2008 = vmatmul.mubr.msk.bf16.gmra.mrb[12].mxu0 %vm573_vm2, %v2150_v25  ;;  %v2660_v25 = vld [vmem:[#allocation2 + $0x78] sm:$0xff] }
 0x141   : > { %v2511_v26 = vpop.f32.mrb[0].mxu0 }
 0x142   : > { %739 = vmax.xlane.f32.xlu1 %v2511_v26  ;;  %v2514_v27 = vpop.f32.mrb[1].mxu0 }
 0x143   : > { %735 = vmax.xlane.f32.xlu0 %v2514_v27  ;;  %v2517_v28 = vpop.f32.mrb[2].mxu0 }
 0x144   : > { %v2519_v29 = vpop.f32.mrb[3].mxu0 }
 0x146   : > { %741 = vmax.xlane.f32.xlu1 %v2517_v28 }
 0x147   : > { %737 = vmax.xlane.f32.xlu0 %v2519_v29 }
 0x149   : > { %v2523_v30 = vpop.f32.mrb[4].mxu0 }
 0x14a   : > { %v2525_v31 = vpop.f32.mrb[5].mxu0 }
 0x14b   : > { %743 = vmax.xlane.f32.xlu0 %v2525_v31  ;;  %v2528_v32 = vpop.f32.mrb[6].mxu0 }
 0x14c   : > { %749 = vmax.xlane.f32.xlu1 %v2528_v32  ;;  %v2531_v33 = vpop.f32.mrb[7].mxu0 }
 0x14f   : > { %747 = vmax.xlane.f32.xlu0 %v2523_v30 }
 0x150   : > { %745 = vmax.xlane.f32.xlu1 %v2531_v33 }
 0x151   : > { %v2535_v34 = vpop.f32.mrb[8].mxu0 }
 0x152   : > { %v2537_v36 = vpop.f32.mrb[9].mxu0 }
 0x153   : > { %v2539_v37 = vpop.f32.mrb[10].mxu0  ;;  %751 = vmax.xlane.f32.xlu0 %v2537_v36 }
 0x154   : > { %757 = vmax.xlane.f32.xlu1 %v2539_v37  ;;  %v2543_v38 = vpop.f32.mrb[11].mxu0 }
 0x157   : > { %755 = vmax.xlane.f32.xlu0 %v2535_v34 }
 0x158   : > { %753 = vmax.xlane.f32.xlu1 %v2543_v38 }
 0x159   : > { %v2547_v39 = vpop.f32.mrb[12].mxu0 }
 0x15a   : > { %v2549_v40 = vpop.f32.mrb[13].mxu0 }
 0x15b   : > { %v2551_v41 = vpop.f32.mrb[14].mxu0  ;;  %759 = vmax.xlane.f32.xlu0 %v2549_v40 }
 0x15c   : > { %765 = vmax.xlane.f32.xlu1 %v2551_v41  ;;  %v2555_v42 = vpop.f32.mrb[15].mxu0 }
 0x15f   : > { %763 = vmax.xlane.f32.xlu0 %v2547_v39 }
 0x160   : > { %761 = vmax.xlane.f32.xlu1 %v2555_v42 }
 0x1cf   : > { %v740_v47 = vpop.xlane.xlu1 %739 }
 0x1d0   : > { %v2566_v48 = vmax.f32 %v2561_v45, %v740_v47  ;;  %v736_v49 = vpop.xlane.xlu0 %735 }
 0x1d1   : > { %v2569_v50 = vmax.f32 %v2563_v46, %v736_v49 }
 0x1d2   : > { %1371 = vst.msk [vmem:[#allocation2 + $0x10] sm:$0xff] %vm1039_vm3, %v2566_v48  ;;  %843 = vperm.xlu1 %2134, %v2566_v48  }
 0x1d3   : > { %1369 = vst.msk [vmem:[#allocation2] sm:$0xff] %vm1039_vm3, %v2569_v50  ;;  %v742_v54 = vpop.xlane.xlu1 %741  ;;  %833 = vperm.xlu0 %2133, %v2569_v50   ;;  %v783_v19 = vsub.f32 %v2563_v46, %v2569_v50  ;;  %v2673_v50 = vld [vmem:[#allocation2 + $0x70] sm:$0xff] }
 0x1d4   : > { %v2583_v55 = vmax.f32 %v2571_v51, %v742_v54  ;;  %v738_v56 = vpop.xlane.xlu0 %737 }
 0x1d5   : > { %v2586_v57 = vmax.f32 %v2576_v52, %v738_v56  ;;  %v799_v43 = vmul.f32 1.442695, %v783_v19 }
 0x1d6   : > { %1372 = vst.msk [vmem:[#allocation2 + $0x18] sm:$0xff] %vm1039_vm3, %v2583_v55  ;;  %848 = vperm.xlu1 %2134, %v2583_v55   ;;  %v786_v44 = vsub.f32 %v2571_v51, %v2583_v55 }
 0x1d7   : > { %1370 = vst.msk [vmem:[#allocation2 + $0x8] sm:$0xff] %vm1039_vm3, %v2586_v57  ;;  %v784_v54 = vsub.f32 %v2576_v52, %v2586_v57  ;;  %2159 = vpow2.f32 %v799_v43 }
 0x1d8   : > { %v744_v61 = vpop.xlane.xlu0 %743  ;;  %v805_v56 = vmul.f32 1.442695, %v786_v44 }
 0x1d9   : > { %v2599_v62 = vmax.f32 %v2591_v58, %v744_v61  ;;  %v750_v63 = vpop.xlane.xlu1 %749 }
 0x1da   : > { %v2602_v0 = vmax.f32 %v2596_v60, %v750_v63  ;;  %838 = vperm.xlu1 %2134, %v2586_v57   ;;  %v785_v57 = vsub.f32 %v2561_v45, %v2566_v48  ;;  %2161 = vpow2.f32 %v805_v56 }
 0x1db   : > { %1373 = vst.msk [vmem:[#allocation2 + $0x20] sm:$0xff] %vm1039_vm3, %v2599_v62  ;;  %v787_v9 = vsub.f32 %v2591_v58, %v2599_v62 }
 0x1dc   : > { %1376 = vst.msk [vmem:[#allocation2 + $0x38] sm:$0xff] %vm1039_vm3, %v2602_v0  ;;  %v748_v4 = vpop.xlane.xlu0 %747 }
 0x1dd   : > { %v2615_v5 = vmax.f32 %v2605_v1, %v748_v4  ;;  %v746_v6 = vpop.xlane.xlu1 %745  ;;  %v801_v4 = vmul.f32 1.442695, %v784_v54 }
 0x1de   : > { %v2618_v7 = vmax.f32 %v2610_v3, %v746_v6 }
 0x1df   : > { %1375 = vst.msk [vmem:[#allocation2 + $0x30] sm:$0xff] %vm1039_vm3, %v2615_v5  ;;  %863 = vperm.xlu1 %2134, %v2615_v5   ;;  %2163 = vpow2.f32 %v801_v4 }
 0x1e0   : > { %1374 = vst.msk [vmem:[#allocation2 + $0x28] sm:$0xff] %vm1039_vm3, %v2618_v7  ;;  %v752_v11 = vpop.xlane.xlu0 %751  ;;  %v788_v59 = vsub.f32 %v2610_v3, %v2618_v7  ;;  %v790_v3 = vsub.f32 %v2596_v60, %v2602_v0  ;;  %v807_v60 = vmul.f32 1.442695, %v787_v9 }
 0x1e1   : > { %v758_v12 = vpop.xlane.xlu1 %757  ;;  %v2631_v13 = vmax.f32 %v2620_v8, %v752_v11  ;;  %v2706_v48 = vpop.eup %2159 }
 0x1e2   : > { %v2634_v14 = vmax.f32 %v2626_v10, %v758_v12  ;;  %v809_v6 = vmul.f32 1.442695, %v788_v59  ;;  %v813_v11 = vmul.f32 1.442695, %v790_v3 }
 0x1e3   : > { %1377 = vst.msk [vmem:[#allocation2 + $0x40] sm:$0xff] %vm1039_vm3, %v2631_v13  ;;  %853 = vperm.xlu1 %2134, %v2599_v62  }
 0x1e4   : > { %1380 = vst.msk [vmem:[#allocation2 + $0x58] sm:$0xff] %vm1039_vm3, %v2634_v14  ;;  %v756_v18 = vpop.xlane.xlu0 %755  ;;  %2165 = vpow2.f32 %v809_v6  ;;  %v794_v45 = vsub.f32 %v2626_v10, %v2634_v14  ;;  %v2714_v12 = vpop.eup %2161 }
 0x1e5   : > { %v754_v20 = vpop.xlane.xlu1 %753  ;;  %v2649_v21 = vmax.f32 %v2636_v15, %v756_v18 }
 0x1e6   : > { %v2652_v22 = vmax.f32 %v2642_v17, %v754_v20  ;;  %v821_v58 = vmul.f32 1.442695, %v794_v45 }
 0x1e7   : > { %1379 = vst.msk [vmem:[#allocation2 + $0x50] sm:$0xff] %vm1039_vm3, %v2649_v21  ;;  %858 = vperm.xlu1 %2134, %v2618_v7   ;;  %v803_v7 = vmul.f32 1.442695, %v785_v57 }
 0x1e8   : > { %1378 = vst.msk [vmem:[#allocation2 + $0x48] sm:$0xff] %vm1039_vm3, %v2652_v22  ;;  %878 = vperm.xlu0 %2133, %v2652_v22   ;;  %v760_v35 = vpop.xlane.xlu0 %759  ;;  %v792_v62 = vsub.f32 %v2642_v17, %v2652_v22  ;;  %v791_v17 = vsub.f32 %v2620_v8, %v2631_v13 }
 0x1e9   : > { %v766_v46 = vpop.xlane.xlu1 %765  ;;  %v2668_v47 = vmax.f32 %v2654_v23, %v760_v35  ;;  %2167 = vpow2.f32 %v803_v7  ;;  %v2720_v16 = vpop.eup %2163 }
 0x1ea   : > { %v2671_v49 = vmax.f32 %v2660_v25, %v766_v46  ;;  %2169 = vpow2.f32 %v813_v11  ;;  %v815_v22 = vmul.f32 1.442695, %v791_v17 }
 0x1eb   : > { %1381 = vst.msk [vmem:[#allocation2 + $0x60] sm:$0xff] %vm1039_vm3, %v2668_v47  ;;  %868 = vperm.xlu1 %2134, %v2602_v0   ;;  %v789_v0 = vsub.f32 %v2605_v1, %v2615_v5  ;;  %2171 = vpow2.f32 %v807_v60  ;;  %v817_v1 = vmul.f32 1.442695, %v792_v62  ;;  %v795_v24 = vsub.f32 %v2654_v23, %v2668_v47 }
 0x1ec   : > { %v798_v51 = vsub.f32 %v2660_v25, %v2671_v49  ;;  %1384 = vst.msk [vmem:[#allocation2 + $0x78] sm:$0xff] %vm1039_vm3, %v2671_v49  ;;  %888 = vperm.xlu0 %2133, %v2634_v14   ;;  %v764_v55 = vpop.xlane.xlu0 %763  ;;  %v793_v14 = vsub.f32 %v2636_v15, %v2649_v21  ;;  %2173 = vpow2.f32 %v821_v58 }
 0x1ed   : > { %v762_v61 = vpop.xlane.xlu1 %761  ;;  %v2688_v63 = vmax.f32 %v2673_v50, %v764_v55  ;;  %v811_v10 = vmul.f32 1.442695, %v789_v0  ;;  %v823_v35 = vmul.f32 1.442695, %v795_v24 }
 0x1ee   : > { %v780_v2 = vmax.f32 %v732_v53, %v762_v61  ;;  %v2722_v18 = vpop.eup %2165  ;;  %v819_v19 = vmul.f32 1.442695, %v793_v14 }
 0x1ef   : > { %v797_v52 = vsub.f32 %v2673_v50, %v2688_v63  ;;  %1383 = vst.msk [vmem:[#allocation2 + $0x70] sm:$0xff] %vm1039_vm3, %v2688_v63  ;;  %873 = vperm.xlu1 %2134, %v2631_v13   ;;  %2175 = vpow2.f32 %v811_v10 }
 0x1f0   : > { %1382 = vst.msk [vmem:[#allocation2 + $0x68] sm:$0xff] %vm1039_vm3, %v780_v2  ;;  %898 = vperm.xlu0 %2133, %v780_v2   ;;  %v796_v5 = vsub.f32 %v732_v53, %v780_v2  ;;  %2177 = vpow2.f32 %v817_v1 }
 0x1f1   : > { %2179 = vpow2.f32 %v819_v19 }
 0x1f2   : > { %v825_v15 = vmul.f32 1.442695, %v796_v5 }
 0x1f3   : > { %883 = vperm.xlu1 %2134, %v2649_v21   ;;  %v2728_v20 = vpop.eup %2167 }
 0x1f4   : > { %908 = vperm.xlu0 %2133, %v2671_v49   ;;  %v2730_v21 = vpop.eup %2169  ;;  %2181 = vpow2.f32 %v825_v15 }
 0x1f5   : > { %v2736_v8 = vpop.eup %2171  ;;  %2183 = vpow2.f32 %v815_v22 }
 0x1f6   : > { %v2738_v13 = vpop.eup %2173  ;;  %2185 = vpow2.f32 %v823_v35 }
 0x1f7   : > { %893 = vperm.xlu1 %2134, %v2668_v47  }
 0x1f8   : > { %1074 = vperm.xlu0 %2133, %v2706_v48  }
 0x1f9   : > { %v2742_v43 = vpop.eup %2175 }
 0x1fa   : > { %v2744_v44 = vpop.eup %2177 }
 0x1fb   : > { %903 = vperm.xlu1 %2134, %v2688_v63   ;;  %v2748_v23 = vpop.eup %2179 }
 0x1fc   : > { %1089 = vperm.xlu0 %2133, %v2714_v12  }
 0x1fe   : > { %v2750_v46 = vpop.eup %2181 }
 0x1ff   : > { %1079 = vperm.xlu1 %2134, %v2720_v16   ;;  %v2754_v47 = vpop.eup %2183 }
 0x200   : > { %1099 = vperm.xlu0 %2133, %v2722_v18   ;;  %v2757_v53 = vpop.eup %2185 }
 0x203   : > { %1084 = vperm.xlu1 %2134, %v2728_v20  }
 0x204   : > { %1109 = vperm.xlu0 %2133, %v2730_v21  }
 0x207   : > { %1094 = vperm.xlu1 %2134, %v2736_v8  }
 0x208   : > { %1129 = vperm.xlu0 %2133, %v2738_v13  }
 0x20b   : > { %1104 = vperm.xlu1 %2134, %v2742_v43  }
 0x20c   : > { %1119 = vperm.xlu0 %2133, %v2744_v44  }
 0x20f   : > { %1124 = vperm.xlu1 %2134, %v2748_v23  }
 0x210   : > { %1139 = vperm.xlu0 %2133, %v2750_v46  }
 0x213   : > { %1114 = vperm.xlu1 %2134, %v2754_v47  }
 0x217   : > { %1134 = vperm.xlu1 %2134, %v2757_v53  }
 0x251   : > { %v844_v54 = vpop.permute.xlu1 %843 }
 0x252   : > { %v913_v55 = vsub.f32 %v2511_v26, %v844_v54  ;;  %v834_v56 = vpop.permute.xlu0 %833 }
 0x253   : > { %v911_v59 = vsub.f32 %v2514_v27, %v834_v56 }
 0x254   : > { %v931_v61 = vmul.f32 1.442695, %v913_v55 }
 0x255   : > { %v927_v2 = vmul.f32 1.442695, %v911_v59  ;;  %v849_v57 = vpop.permute.xlu1 %848 }
 0x256   : > { %2187 = vpow2.f32 %v931_v61  ;;  %v914_v4 = vsub.f32 %v2517_v28, %v849_v57 }
 0x257   : > { %2189 = vpow2.f32 %v927_v2 }
 0x258   : > { %v933_v3 = vmul.f32 1.442695, %v914_v4 }
 0x259   : > { %v839_v6 = vpop.permute.xlu1 %838 }
 0x25a   : > { %2191 = vpow2.f32 %v933_v3  ;;  %v912_v7 = vsub.f32 %v2519_v29, %v839_v6 }
 0x25c   : > { %v929_v9 = vmul.f32 1.442695, %v912_v7 }
 0x25e   : > { %2193 = vpow2.f32 %v929_v9  ;;  %v864_v11 = vpop.permute.xlu1 %863 }
 0x25f   : > { %v917_v26 = vsub.f32 %v2523_v30, %v864_v11 }
 0x260   : > { %v2188_v45 = vpop.eup %2187 }
 0x261   : > { %v2190_v60 = vpop.eup %2189  ;;  %v939_v27 = vmul.f32 1.442695, %v917_v26  ;;  %995 = vadd.xlane.f32.xlu0 %v2188_v45 }
 0x262   : > { %991 = vadd.xlane.f32.xlu1 %v2190_v60  ;;  %v854_v0 = vpop.permute.xlu1 %853 }
 0x263   : > { %2195 = vpow2.f32 %v939_v27  ;;  %v915_v28 = vsub.f32 %v2525_v31, %v854_v0 }
 0x264   : > { %v2192_v58 = vpop.eup %2191 }
 0x265   : > { %v935_v62 = vmul.f32 1.442695, %v915_v28  ;;  %v1169_v10 = vpack.c.bf16 %v2192_v58, %v2188_v45 }
 0x266   : > { %997 = vadd.xlane.f32.xlu1 %v2192_v58  ;;  %v859_v14 = vpop.permute.xlu1 %858 }
 0x267   : > { %2197 = vpow2.f32 %v935_v62  ;;  %v916_v29 = vsub.f32 %v2531_v33, %v859_v14  ;;  %v879_v1 = vpop.permute.xlu0 %878 }
 0x268   : > { %v2194_v5 = vpop.eup %2193  ;;  %v920_v19 = vsub.f32 %v2543_v38, %v879_v1 }
 0x269   : > { %v937_v30 = vmul.f32 1.442695, %v916_v29  ;;  %993 = vadd.xlane.f32.xlu0 %v2194_v5  ;;  %v1168_v17 = vpack.c.bf16 %v2194_v5, %v2190_v60 }
 0x26a   : > { %v869_v15 = vpop.permute.xlu1 %868  ;;  %v945_v54 = vmul.f32 1.442695, %v920_v19  ;;  %v827_v19 = vmul.f32 1.442695, %v797_v52 }
 0x26b   : > { %2199 = vpow2.f32 %v937_v30  ;;  %v918_v22 = vsub.f32 %v2528_v32, %v869_v15  ;;  %v889_v31 = vpop.permute.xlu0 %888  ;;  %2027 = vmatprep.mubr.bf16.mxu1 %v1168_v17  ;;  %v829_v15 = vmul.f32 1.442695, %v798_v51 }
 0x26c   : > { %2028 = vmatmul.mubr.bf16.vlgmr.msra.gmra.mrb[0].mxu1 %v1169_v10  ;;  %v922_v55 = vsub.f32 %v2539_v37, %v889_v31 }
 0x26d   : > { %v2196_v24 = vpop.eup %2195  ;;  %v941_v35 = vmul.f32 1.442695, %v918_v22 }
 0x26e   : > { %1003 = vadd.xlane.f32.xlu0 %v2196_v24  ;;  %v874_v33 = vpop.permute.xlu1 %873  ;;  %v949_v2 = vmul.f32 1.442695, %v922_v55 }
 0x26f   : > { %2201 = vpow2.f32 %v941_v35  ;;  %v919_v56 = vsub.f32 %v2537_v36, %v874_v33  ;;  %v899_v59 = vpop.permute.xlu0 %898 }
 0x270   : > { %2203 = vpow2.f32 %v945_v54  ;;  %v924_v32 = vsub.f32 %v2555_v42, %v899_v59 }
 0x271   : > { %v2198_v61 = vpop.eup %2197  ;;  %v943_v38 = vmul.f32 1.442695, %v919_v56 }
 0x272   : > { %999 = vadd.xlane.f32.xlu0 %v2198_v61  ;;  %v884_v57 = vpop.permute.xlu1 %883  ;;  %v953_v7 = vmul.f32 1.442695, %v924_v32 }
 0x273   : > { %2205 = vpow2.f32 %v943_v38  ;;  %v921_v4 = vsub.f32 %v2535_v34, %v884_v57  ;;  %v909_v3 = vpop.permute.xlu0 %908 }
 0x274   : > { %2207 = vpow2.f32 %v949_v2  ;;  %v926_v9 = vsub.f32 %v2551_v41, %v909_v3  ;;  %v959_v2 = vld [vmem:[#allocation3] sm:$0xff] }
 0x275   : > { %v2200_v6 = vpop.eup %2199  ;;  %v947_v37 = vmul.f32 1.442695, %v921_v4  ;;  %v975_v4 = vmul.f32 %v2706_v48, %v959_v2  ;;  %v965_v48 = vld [vmem:[#allocation3 + $0x30] sm:$0xff] }
 0x276   : > { %v894_v36 = vpop.permute.xlu1 %893  ;;  %v1170_v11 = vpack.c.bf16 %v2200_v6, %v2198_v61  ;;  %v957_v60 = vmul.f32 1.442695, %v926_v9  ;;  %v961_v61 = vld [vmem:[#allocation3 + $0x10] sm:$0xff] }
 0x277   : > { %2209 = vpow2.f32 %v947_v37  ;;  %v923_v26 = vsub.f32 %v2549_v40, %v894_v36  ;;  %v977_v32 = vmul.f32 %v2728_v20, %v961_v61  ;;  %v962_v37 = vld [vmem:[#allocation3 + $0x18] sm:$0xff]  ;;  %v960_v36 = vld [vmem:[#allocation3 + $0x8] sm:$0xff] }
 0x278   : > { %2031 = vmatprep.mubr.bf16.mxu1 %v1170_v11  ;;  %2211 = vpow2.f32 %v953_v7  ;;  %v978_v9 = vmul.f32 %v2714_v12, %v962_v37 }
 0x279   : > { %v2202_v45 = vpop.eup %2201  ;;  %v951_v42 = vmul.f32 1.442695, %v923_v26 }
 0x27a   : > { %1005 = vadd.xlane.f32.xlu1 %v2202_v45  ;;  %v904_v27 = vpop.permute.xlu1 %903  ;;  %v1171_v34 = vpack.c.bf16 %v2202_v45, %v2196_v24  ;;  %v2204_v28 = vpop.eup %2203  ;;  %v976_v45 = vmul.f32 %v2720_v16, %v960_v36  ;;  %v966_v16 = vld [vmem:[#allocation3 + $0x38] sm:$0xff]  ;;  %v971_v36 = vld [vmem:[#allocation3 + $0x60] sm:$0xff] }
 0x27b   : > { %2213 = vpow2.f32 %v951_v42  ;;  %v925_v0 = vsub.f32 %v2547_v39, %v904_v27  ;;  %v2788_v24 = vpop.permute.xlu0 %1074 }
 0x27c   : > { %2032 = vmatmul.mubr.bf16.gmra.mrb[4].mxu1 %v1171_v34  ;;  %2215 = vpow2.f32 %v957_v60  ;;  %v981_v60 = vmul.f32 %v2742_v43, %v965_v48  ;;  %v963_v34 = vld [vmem:[#allocation3 + $0x20] sm:$0xff] }
 0x27d   : > { %v2206_v58 = vpop.eup %2205  ;;  %v955_v41 = vmul.f32 1.442695, %v925_v0  ;;  %v979_v12 = vmul.f32 %v2736_v8, %v963_v34  ;;  %v1057_v34 = vld [vmem:[#allocation4 + $0x8] sm:$0xff] }
 0x27e   : > { %1001 = vadd.xlane.f32.xlu1 %v2200_v6  ;;  %v1172_v62 = vpack.c.bf16 %v2204_v28, %v2206_v58  ;;  %v2208_v40 = vpop.eup %2207  ;;  %v2790_v35 = vpop.permute.xlu1 %1079 }
 0x27f   : > { %2217 = vpow2.f32 %v955_v41  ;;  %v2792_v50 = vpop.permute.xlu0 %1089  ;;  %v982_v41 = vmul.f32 %v2730_v21, %v966_v16  ;;  %v967_v21 = vld [vmem:[#allocation3 + $0x40] sm:$0xff]  ;;  %v1153_v16 = vmul.f32 %v2790_v35, %v1057_v34 }
 0x280   : > { %2035 = vmatprep.mubr.bf16.mxu1 %v1172_v62  ;;  %2219 = vpow2.f32 %v827_v19  ;;  %v968_v19 = vld [vmem:[#allocation3 + $0x48] sm:$0xff] }
 0x281   : > { %v2210_v10 = vpop.eup %2209  ;;  %2221 = vpow2.f32 %v829_v15  ;;  %v984_v2 = vmul.f32 %v2744_v44, %v968_v19 }
 0x282   : > { %1013 = vadd.xlane.f32.xlu1 %v2208_v40  ;;  %1011 = vadd.xlane.f32.xlu0 %v2210_v10  ;;  %v1173_v14 = vpack.c.bf16 %v2208_v40, %v2210_v10  ;;  %v2212_v29 = vpop.eup %2211  ;;  %v2794_v63 = vpop.permute.xlu1 %1084  ;;  %v964_v40 = vld [vmem:[#allocation3 + $0x28] sm:$0xff] }
 0x283   : > { %v2796_v52 = vpop.permute.xlu0 %1099  ;;  %v980_v43 = vmul.f32 %v2722_v18, %v964_v40  ;;  %v983_v18 = vmul.f32 %v2754_v47, %v967_v21  ;;  %v972_v47 = vld [vmem:[#allocation3 + $0x68] sm:$0xff] }
 0x284   : > { %2036 = vmatmul.mubr.bf16.gmra.mrb[8].mxu1 %v1173_v14 }
 0x285   : > { %v2214_v1 = vpop.eup %2213 }
 0x286   : > { %1009 = vadd.xlane.f32.xlu1 %v2204_v28  ;;  %1007 = vadd.xlane.f32.xlu0 %v2206_v58  ;;  %v1174_v39 = vpack.c.bf16 %v2212_v29, %v2214_v1  ;;  %v2216_v5 = vpop.eup %2215  ;;  %v2798_v25 = vpop.permute.xlu1 %1094 }
 0x287   : > { %v2800_v49 = vpop.permute.xlu0 %1109 }
 0x288   : > { %2039 = vmatprep.mubr.bf16.mxu1 %v1174_v39 }
 0x289   : > { %v2218_v30 = vpop.eup %2217 }
 0x28a   : > { %1021 = vadd.xlane.f32.xlu1 %v2216_v5  ;;  %1019 = vadd.xlane.f32.xlu0 %v2218_v30  ;;  %v1175_v17 = vpack.c.bf16 %v2216_v5, %v2218_v30  ;;  %v2782_v22 = vpop.eup %2219  ;;  %v2802_v51 = vpop.permute.xlu1 %1104 }
 0x28b   : > { %v2785_v31 = vpop.eup %2221  ;;  %v2804_v54 = vpop.permute.xlu0 %1129 }
 0x28c   : > { %2040 = vmatmul.mubr.bf16.gmra.mrb[12].mxu1 %v1175_v17 }
 0x28e   : > { %1017 = vadd.xlane.f32.xlu1 %v2212_v29  ;;  %1015 = vadd.xlane.f32.xlu0 %v2214_v1  ;;  %v2806_v55 = vpop.permute.xlu1 %1124  ;;  %v969_v29 = vld [vmem:[#allocation3 + $0x50] sm:$0xff]  ;;  %v970_v1 = vld [vmem:[#allocation3 + $0x58] sm:$0xff] }
 0x28f   : > { %v2808_v33 = vpop.permute.xlu0 %1119  ;;  %v985_v8 = vmul.f32 %v2748_v23, %v969_v29  ;;  %v986_v5 = vmul.f32 %v2738_v13, %v970_v1  ;;  %v974_v23 = vld [vmem:[#allocation3 + $0x78] sm:$0xff] }
 0x290   : > { %v990_v37 = vmul.f32 %v2785_v31, %v974_v23 }
 0x292   : > { %v2810_v56 = vpop.permute.xlu1 %1114 }
 0x293   : > { %v2812_v59 = vpop.permute.xlu0 %1139 }
 0x296   : > { %v2814_v38 = vpop.permute.xlu1 %1134 }
 0x29f   : > { %1144 = vperm.xlu1 %2134, %v2782_v22  }
 0x2a4   : > { %1149 = vperm.xlu0 %2133, %v2785_v31   ;;  %v1058_v31 = vld [vmem:[#allocation4 + $0x10] sm:$0xff] }
 0x2ee   : > { %v996_v57 = vpop.xlane.xlu0 %995 }
 0x2ef   : > { %v1025_v3 = vadd.f32 %v996_v57, %v977_v32  ;;  %v992_v6 = vpop.xlane.xlu1 %991 }
 0x2f0   : > { %v1023_v7 = vadd.f32 %v992_v6, %v975_v4  ;;  %v973_v4 = vld [vmem:[#allocation3 + $0x70] sm:$0xff] }
 0x2f1   : > { %1042 = vst.msk [vmem:[#allocation3 + $0x10] sm:$0xff] %vm1039_vm3, %v1025_v3  ;;  %v989_v6 = vmul.f32 %v2782_v22, %v973_v4 }
 0x2f2   : > { %1040 = vst.msk [vmem:[#allocation3] sm:$0xff] %vm1039_vm3, %v1023_v7 }
 0x2f3   : > { %v998_v11 = vpop.xlane.xlu1 %997 }
 0x2f4   : > { %v1026_v26 = vadd.f32 %v998_v11, %v978_v9 }
 0x2f6   : > { %1043 = vst.msk [vmem:[#allocation3 + $0x18] sm:$0xff] %vm1039_vm3, %v1026_v26  ;;  %v994_v20 = vpop.xlane.xlu0 %993  ;;  %v987_v26 = vmul.f32 %v2757_v53, %v971_v36 }
 0x2f7   : > { %v1024_v42 = vadd.f32 %v994_v20, %v976_v45  ;;  %v988_v45 = vmul.f32 %v2750_v46, %v972_v47  ;;  %v1068_v47 = vld [vmem:[#allocation4 + $0x60] sm:$0xff] }
 0x2f9   : > { %1041 = vst.msk [vmem:[#allocation3 + $0x8] sm:$0xff] %vm1039_vm3, %v1024_v42 }
 0x2fb   : > { %v1004_v27 = vpop.xlane.xlu0 %1003 }
 0x2fc   : > { %v1029_v0 = vadd.f32 %v1004_v27, %v981_v60  ;;  %v1056_v60 = vld [vmem:[#allocation4] sm:$0xff]  ;;  %v1059_v27 = vld [vmem:[#allocation4 + $0x18] sm:$0xff] }
 0x2fd   : > { %v1155_v53 = vmul.f32 %v2792_v50, %v1059_v27  ;;  %v1063_v50 = vld [vmem:[#allocation4 + $0x38] sm:$0xff] }
 0x2fe   : > { %1046 = vst.msk [vmem:[#allocation3 + $0x30] sm:$0xff] %vm1039_vm3, %v1029_v0  ;;  %v1154_v0 = vmul.f32 %v2794_v63, %v1058_v31  ;;  %v1060_v63 = vld [vmem:[#allocation4 + $0x20] sm:$0xff] }
 0x2ff   : > { %v1000_v28 = vpop.xlane.xlu0 %999  ;;  %v1156_v35 = vmul.f32 %v2798_v25, %v1060_v63  ;;  %v1067_v25 = vld [vmem:[#allocation4 + $0x58] sm:$0xff] }
 0x300   : > { %v1027_v58 = vadd.f32 %v1000_v28, %v979_v12  ;;  %v1152_v12 = vmul.f32 %v2788_v24, %v1056_v60  ;;  %v1062_v24 = vld [vmem:[#allocation4 + $0x30] sm:$0xff] }
 0x301   : > { %v1158_v29 = vmul.f32 %v2802_v51, %v1062_v24  ;;  %v1064_v51 = vld [vmem:[#allocation4 + $0x40] sm:$0xff] }
 0x302   : > { %1044 = vst.msk [vmem:[#allocation3 + $0x20] sm:$0xff] %vm1039_vm3, %v1027_v58 }
 0x307   : > { %v1006_v62 = vpop.xlane.xlu1 %1005 }
 0x308   : > { %v1030_v10 = vadd.f32 %v1006_v62, %v982_v41 }
 0x30a   : > { %1047 = vst.msk [vmem:[#allocation3 + $0x38] sm:$0xff] %vm1039_vm3, %v1030_v10 }
 0x30b   : > { %v1002_v14 = vpop.xlane.xlu1 %1001 }
 0x30c   : > { %v1028_v39 = vadd.f32 %v1002_v14, %v980_v43  ;;  %v1061_v14 = vld [vmem:[#allocation4 + $0x28] sm:$0xff] }
 0x30e   : > { %1045 = vst.msk [vmem:[#allocation3 + $0x28] sm:$0xff] %vm1039_vm3, %v1028_v39  ;;  %v1159_v39 = vmul.f32 %v2800_v49, %v1063_v50  ;;  %v1065_v49 = vld [vmem:[#allocation4 + $0x48] sm:$0xff] }
 0x30f   : > { %v1012_v30 = vpop.xlane.xlu0 %1011  ;;  %v1014_v17 = vpop.xlane.xlu1 %1013 }
 0x310   : > { %v1033_v15 = vadd.f32 %v1012_v30, %v985_v8  ;;  %v1034_v61 = vadd.f32 %v1014_v17, %v986_v5  ;;  %v1157_v30 = vmul.f32 %v2796_v52, %v1061_v14  ;;  %v1160_v52 = vmul.f32 %v2810_v56, %v1064_v51  ;;  %v1071_v56 = vld [vmem:[#allocation4 + $0x78] sm:$0xff] }
 0x312   : > { %1050 = vst.msk [vmem:[#allocation3 + $0x50] sm:$0xff] %vm1039_vm3, %v1033_v15  ;;  %1051 = vst.msk [vmem:[#allocation3 + $0x58] sm:$0xff] %vm1039_vm3, %v1034_v61  ;;  %v1066_v61 = vld [vmem:[#allocation4 + $0x50] sm:$0xff] }
 0x313   : > { %v1008_v32 = vpop.xlane.xlu0 %1007  ;;  %v1010_v57 = vpop.xlane.xlu1 %1009 }
 0x314   : > { %v1031_v3 = vadd.f32 %v1008_v32, %v983_v18  ;;  %v1032_v13 = vadd.f32 %v1010_v57, %v984_v2  ;;  %v1162_v2 = vmul.f32 %v2806_v55, %v1066_v61  ;;  %v1163_v57 = vmul.f32 %v2804_v54, %v1067_v25 }
 0x316   : > { %1048 = vst.msk [vmem:[#allocation3 + $0x40] sm:$0xff] %vm1039_vm3, %v1031_v3  ;;  %1049 = vst.msk [vmem:[#allocation3 + $0x48] sm:$0xff] %vm1039_vm3, %v1032_v13  ;;  %v1161_v3 = vmul.f32 %v2808_v33, %v1065_v49 }
 0x317   : > { %v1020_v7 = vpop.xlane.xlu0 %1019  ;;  %v1022_v9 = vpop.xlane.xlu1 %1021 }
 0x318   : > { %v1037_v11 = vadd.f32 %v1020_v7, %v989_v6  ;;  %v1038_v44 = vadd.f32 %v1022_v9, %v990_v37  ;;  %v1070_v9 = vld [vmem:[#allocation4 + $0x70] sm:$0xff] }
 0x31a   : > { %1054 = vst.msk [vmem:[#allocation3 + $0x70] sm:$0xff] %vm1039_vm3, %v1037_v11  ;;  %1055 = vst.msk [vmem:[#allocation3 + $0x78] sm:$0xff] %vm1039_vm3, %v1038_v44  ;;  %v1069_v11 = vld [vmem:[#allocation4 + $0x68] sm:$0xff]  ;;  %v1164_v44 = vmul.f32 %v2814_v38, %v1068_v47 }
 0x31b   : > { %v1016_v20 = vpop.xlane.xlu0 %1015  ;;  %v1018_v42 = vpop.xlane.xlu1 %1017 }
 0x31c   : > { %v1035_v48 = vadd.f32 %v1016_v20, %v987_v26  ;;  %v1036_v22 = vadd.f32 %v1018_v42, %v988_v45 }
 0x31d   : > { %v1413_v38 = vld [vmem:[#allocation3 + $0x40] sm:$0xff] (!%p1926_p10) }
 0x31e   : > { %1052 = vst.msk [vmem:[#allocation3 + $0x60] sm:$0xff] %vm1039_vm3, %v1035_v48  ;;  %1053 = vst.msk [vmem:[#allocation3 + $0x68] sm:$0xff] %vm1039_vm3, %v1036_v22  ;;  %v1165_v48 = vmul.f32 %v2812_v59, %v1069_v11  ;;  %v2316_v59 = vmov (!%p1926_p10), 0   ;;  %2225 = vrcp.f32 (!%p1926_p10), %v1413_v38 }
 0x31f   : > { %v1145_v36 = vpop.permute.xlu1 %1144  ;;  %2224 = vset.pattern.permute.xlu1 (!%p1926_p10), %v2316_v59  ;;  %2223 = vset.pattern.permute.xlu0 (!%p1926_p10), %v2316_v59 }
 0x320   : > { %v1166_v33 = vmul.f32 %v1145_v36, %v1070_v9 }
 0x323   : > { %v1150_v54 = vpop.permute.xlu0 %1149 }
 0x324   : > { %v1167_v45 = vmul.f32 %v1150_v54, %v1071_v56 }
 0x325   : > { %v1418_v63 = vld [vmem:[#allocation3 + $0x68] sm:$0xff] (!%p1926_p10)  ;;  %v1417_v14 = vld [vmem:[#allocation3 + $0x60] sm:$0xff] (!%p1926_p10) }
 0x33f   : > { %v2029_v28 = vpop.f32.mrb[0].mxu1 }
 0x340   : > { %v1339_v46 = vadd.f32 %v2029_v28, %v1154_v0  ;;  %v1274_v58 = vpop.f32.mrb[1].mxu1  ;;  %v1405_v0 = vld [vmem:[#allocation3] sm:$0xff] (!%p1926_p10)  ;;  %v1406_v28 = vld [vmem:[#allocation3 + $0x8] sm:$0xff] (!%p1926_p10) }
 0x341   : > { %v1337_v41 = vadd.f32 %v1274_v58, %v1152_v12  ;;  %v2030_v62 = vpop.f32.mrb[2].mxu1  ;;  %v1414_v12 = vld [vmem:[#allocation3 + $0x48] sm:$0xff] (!%p1926_p10)  ;;  %2227 = vrcp.f32 (!%p1926_p10), %v1405_v0  ;;  %v1416_v58 = vld [vmem:[#allocation3 + $0x58] sm:$0xff] (!%p1926_p10) }
 0x342   : > { %1355 = vst.msk [vmem:[#allocation4 + $0x10] sm:$0xff] %vm573_vm2, %v1339_v46  ;;  %v1340_v40 = vadd.f32 %v2030_v62, %v1155_v53  ;;  %v1277_v10 = vpop.f32.mrb[3].mxu1  ;;  %2229 = vrcp.f32 (!%p1926_p10), %v1414_v12  ;;  %v1408_v53 = vld [vmem:[#allocation3 + $0x18] sm:$0xff] (!%p1926_p10)  ;;  %v1407_v46 = vld [vmem:[#allocation3 + $0x10] sm:$0xff] (!%p1926_p10) }
 0x343   : > { %1353 = vst.msk [vmem:[#allocation4] sm:$0xff] %vm573_vm2, %v1337_v41  ;;  %v1338_v43 = vadd.f32 %v1277_v10, %v1153_v16  ;;  %2231 = vrcp.f32 (!%p1926_p10), %v1406_v28  ;;  %v1415_v16 = vld [vmem:[#allocation3 + $0x50] sm:$0xff] (!%p1926_p10)  ;;  %v2226_v41 = vpop.eup (!%p1926_p10), %2225 }
 0x344   : > { %1356 = vst.msk [vmem:[#allocation4 + $0x18] sm:$0xff] %vm573_vm2, %v1340_v40  ;;  %2233 = vrcp.f32 (!%p1926_p10), %v1408_v53  ;;  %1479 = vperm.xlu1 (!%p1926_p10), %2224, %v2226_v41   ;;  %v1410_v40 = vld [vmem:[#allocation3 + $0x28] sm:$0xff] (!%p1926_p10) }
 0x345   : > { %1354 = vst.msk [vmem:[#allocation4 + $0x8] sm:$0xff] %vm573_vm2, %v1338_v43  ;;  %2235 = vrcp.f32 (!%p1926_p10), %v1407_v46  ;;  %v1409_v43 = vld [vmem:[#allocation3 + $0x20] sm:$0xff] (!%p1926_p10) }
 0x346   : > { %2237 = vrcp.f32 (!%p1926_p10), %v1416_v58 }
 0x347   : > { %2239 = vrcp.f32 (!%p1926_p10), %v1415_v16 }
 0x348   : > { %2241 = vrcp.f32 (!%p1926_p10), %v1410_v40 }
 0x349   : > { %2243 = vrcp.f32 (!%p1926_p10), %v1409_v43  ;;  %v1391_v47 = vld [vmem:[#allocation4 + $0x10] sm:$0xff] (!%p1926_p10) }
 0x34a   : > { %2245 = vrcp.f32 (!%p1926_p10), %v1418_v63 }
 0x34b   : > { %v2228_v62 = vpop.eup (!%p1926_p10), %2227  ;;  %2247 = vrcp.f32 (!%p1926_p10), %v1417_v14 }
 0x34c   : > { %v2230_v10 = vpop.eup (!%p1926_p10), %2229  ;;  %1439 = vperm.xlu0 (!%p1926_p10), %2223, %v2228_v62  }
 0x34d   : > { %v2232_v24 = vpop.eup (!%p1926_p10), %2231  ;;  %1484 = vperm.xlu1 (!%p1926_p10), %2224, %v2230_v10  }
 0x34e   : > { %v2234_v50 = vpop.eup (!%p1926_p10), %2233 }
 0x34f   : > { %v2033_v1 = vpop.f32.mrb[4].mxu1 }
 0x350   : > { %v1343_v8 = vadd.f32 %v2033_v1, %v1158_v29  ;;  %v1290_v5 = vpop.f32.mrb[5].mxu1  ;;  %1444 = vperm.xlu0 (!%p1926_p10), %2223, %v2232_v24   ;;  %v2236_v29 = vpop.eup (!%p1926_p10), %2235  ;;  %v1541_v1 = vld [vmem:[%s2984_s4] sm:$0x1] (!%p1926_p10) }
 0x351   : > { %v1341_v17 = vadd.f32 %v1290_v5, %v1156_v35  ;;  %v2034_v21 = vpop.f32.mrb[6].mxu1  ;;  %1454 = vperm.xlu1 (!%p1926_p10), %2224, %v2234_v50   ;;  %v1412_v35 = vld [vmem:[#allocation3 + $0x38] sm:$0xff] (!%p1926_p10)  ;;  %2071 = vmatprep.subr.msk.bf16.mxu0 (!%p1926_p10), %vm1573_vm4, %v1541_v1  ;;  %v1575_v5 = vsel (!%p1926_p10), %vm1573_vm4, %v1541_v1, 0 }
 0x352   : > { %1359 = vst.msk [vmem:[#allocation4 + $0x30] sm:$0xff] %vm573_vm2, %v1343_v8  ;;  %v1344_v19 = vadd.f32 %v2034_v21, %v1159_v39  ;;  %v1293_v15 = vpop.f32.mrb[7].mxu1  ;;  %v2238_v39 = vpop.eup (!%p1926_p10), %2237  ;;  %v1411_v8 = vld [vmem:[#allocation3 + $0x30] sm:$0xff] (!%p1926_p10)  ;;  %2044 = vmatpush3.bf16.msra.mxu0 (!%p1926_p10), %v1575_v5  ;;  %2072 = vmatprep.subr.msk.bf16.mxu1 (!%p1926_p10), %vm1573_vm4, %v1541_v1  ;;  %2249 = vrcp.f32 (!%p1926_p10), %v1412_v35 }
 0x353   : > { %1357 = vst.msk [vmem:[#allocation4 + $0x20] sm:$0xff] %vm573_vm2, %v1341_v17  ;;  %v1342_v18 = vadd.f32 %v1293_v15, %v1157_v30  ;;  %v2240_v30 = vpop.eup (!%p1926_p10), %2239  ;;  %2062 = vmatpush3.bf16.msra.mxu1 (!%p1926_p10), %v1575_v5  ;;  %2251 = vrcp.f32 (!%p1926_p10), %v1411_v8  ;;  %v1420_v17 = vld [vmem:[#allocation3 + $0x78] sm:$0xff] (!%p1926_p10) }
 0x354   : > { %1360 = vst.msk [vmem:[#allocation4 + $0x38] sm:$0xff] %vm573_vm2, %v1344_v19  ;;  %1449 = vperm.xlu0 (!%p1926_p10), %2223, %v2236_v29   ;;  %v2242_v21 = vpop.eup (!%p1926_p10), %2241  ;;  %v1419_v19 = vld [vmem:[#allocation3 + $0x70] sm:$0xff] (!%p1926_p10)  ;;  %2253 = vrcp.f32 (!%p1926_p10), %v1420_v17 }
 0x355   : > { %1358 = vst.msk [vmem:[#allocation4 + $0x28] sm:$0xff] %vm573_vm2, %v1342_v18  ;;  %1494 = vperm.xlu1 (!%p1926_p10), %2224, %v2238_v39   ;;  %v2244_v15 = vpop.eup (!%p1926_p10), %2243  ;;  %2255 = vrcp.f32 (!%p1926_p10), %v1419_v19  ;;  %v2893_v19 = vld [vmem:[%s2985_s5] ss:$0 sm:$0xff] (!%p1926_p10) }
 0x356   : > { %v2246_v61 = vpop.eup (!%p1926_p10), %2245 }
 0x357   : > { %v2037_v32 = vpop.f32.mrb[8].mxu1  ;;  %v2248_v18 = vpop.eup (!%p1926_p10), %2247 }
 0x358   : > { %v1347_v4 = vadd.f32 %v2037_v32, %v1162_v2  ;;  %v1306_v23 = vpop.f32.mrb[9].mxu1  ;;  %1489 = vperm.xlu0 (!%p1926_p10), %2223, %v2240_v30  }
 0x359   : > { %v1345_v13 = vadd.f32 %v1306_v23, %v1160_v52  ;;  %v2038_v6 = vpop.f32.mrb[10].mxu1  ;;  %1464 = vperm.xlu1 (!%p1926_p10), %2224, %v2242_v21   ;;  %v1389_v23 = vld [vmem:[#allocation4] sm:$0xff] (!%p1926_p10)  ;;  %v1395_v43 = vld [vmem:[#allocation4 + $0x30] sm:$0xff] (!%p1926_p10) }
 0x35a   : > { %1363 = vst.msk [vmem:[#allocation4 + $0x50] sm:$0xff] %vm573_vm2, %v1347_v4  ;;  %v1348_v37 = vadd.f32 %v2038_v6, %v1163_v57  ;;  %v1309_v7 = vpop.f32.mrb[11].mxu1 }
 0x35b   : > { %1361 = vst.msk [vmem:[#allocation4 + $0x40] sm:$0xff] %vm573_vm2, %v1345_v13  ;;  %v1346_v55 = vadd.f32 %v1309_v7, %v1161_v3  ;;  %v1390_v3 = vld [vmem:[#allocation4 + $0x8] sm:$0xff] (!%p1926_p10)  ;;  %v1396_v10 = vld [vmem:[#allocation4 + $0x38] sm:$0xff] (!%p1926_p10) }
 0x35c   : > { %1364 = vst.msk [vmem:[#allocation4 + $0x58] sm:$0xff] %vm573_vm2, %v1348_v37  ;;  %1459 = vperm.xlu0 (!%p1926_p10), %2223, %v2244_v15   ;;  %v2250_v51 = vpop.eup (!%p1926_p10), %2249 }
 0x35d   : > { %1362 = vst.msk [vmem:[#allocation4 + $0x48] sm:$0xff] %vm573_vm2, %v1346_v55  ;;  %1504 = vperm.xlu1 (!%p1926_p10), %2224, %v2246_v61   ;;  %v2252_v25 = vpop.eup (!%p1926_p10), %2251  ;;  %v1392_v55 = vld [vmem:[#allocation4 + $0x18] sm:$0xff] (!%p1926_p10)  ;;  %v1676_v61 = vld [vmem:[%s2405_s18 + $0x10] sm:$0xff] (!%p1926_p10) }
 0x35e   : > { %v2254_v49 = vpop.eup (!%p1926_p10), %2253 }
 0x35f   : > { %v2041_v26 = vpop.f32.mrb[12].mxu1  ;;  %1388 = sbr.rel (%p1926_p10) target bundleno = 1224 (0x4c8), region = 52  ;;  %v2256_v2 = vpop.eup (!%p1926_p10), %2255 }
 0x360   : > { %v1351_v20 = vadd.f32 %v2041_v26, %v1166_v33  ;;  %v1322_v42 = vpop.f32.mrb[13].mxu1  ;;  %1499 = vperm.xlu0 (!%p1926_p10), %2223, %v2248_v18  }
 0x361   : > { %v1349_v22 = vadd.f32 %v1322_v42, %v1164_v44  ;;  %v2042_v31 = vpop.f32.mrb[14].mxu1  ;;  %1474 = vperm.xlu1 (!%p1926_p10), %2224, %v2250_v51  }
 0x362   : > { %1367 = vst.msk [vmem:[#allocation4 + $0x70] sm:$0xff] %vm573_vm2, %v1351_v20  ;;  %v1352_v60 = vadd.f32 %v2042_v31, %v1167_v45  ;;  %v1325_v27 = vpop.f32.mrb[15].mxu1  ;;  %v1397_v57 = vld [vmem:[#allocation4 + $0x40] sm:$0xff] (!%p1926_p10)  ;;  %v1399_v20 = vld [vmem:[#allocation4 + $0x50] sm:$0xff] (!%p1926_p10) }
 0x363   : > { %1365 = vst.msk [vmem:[#allocation4 + $0x60] sm:$0xff] %vm573_vm2, %v1349_v22  ;;  %v1350_v34 = vadd.f32 %v1325_v27, %v1165_v48  ;;  %v1400_v45 = vld [vmem:[#allocation4 + $0x58] sm:$0xff] (!%p1926_p10)  ;;  %v1394_v27 = vld [vmem:[#allocation4 + $0x28] sm:$0xff] (!%p1926_p10) }
 0x364   : > { %1368 = vst.msk [vmem:[#allocation4 + $0x78] sm:$0xff] %vm573_vm2, %v1352_v60  ;;  %1469 = vperm.xlu0 (!%p1926_p10), %2223, %v2252_v25   ;;  %v1398_v4 = vld [vmem:[#allocation4 + $0x48] sm:$0xff] (!%p1926_p10)  ;;  %v1674_v25 = vld [vmem:[%s2405_s18] sm:$0xff] (!%p1926_p10) }
 0x365   : > { %1366 = vst.msk [vmem:[#allocation4 + $0x68] sm:$0xff] %vm573_vm2, %v1350_v34  ;;  %1514 = vperm.xlu1 (!%p1926_p10), %2224, %v2254_v49   ;;  %v1393_v34 = vld [vmem:[#allocation4 + $0x20] sm:$0xff] (!%p1926_p10) }
 0x368   : > { %1509 = vperm.xlu0 %2223, %v2256_v2  }
 0x369   : > { %v1403_v1 = vld [vmem:[#allocation4 + $0x70] sm:$0xff] }
 0x36a   : > { %v1401_v46 = vld [vmem:[#allocation4 + $0x60] sm:$0xff] }
 0x36b   : > { %v1404_v35 = vld [vmem:[#allocation4 + $0x78] sm:$0xff] }
 0x36c   : > { %v1402_v53 = vld [vmem:[#allocation4 + $0x68] sm:$0xff] }
 0x3c3   : > { %v1480_v52 = vpop.permute.xlu1 %1479 }
 0x3c4   : > { %v1525_v6 = vmul.f32 %v1480_v52, %v1397_v57  ;;  %v1677_v52 = vld [vmem:[%s2405_s18 + $0x18] sm:$0xff] }
 0x3cb   : > { %v1440_v32 = vpop.permute.xlu0 %1439 }
 0x3cc   : > { %v1485_v13 = vpop.permute.xlu1 %1484  ;;  %v1517_v9 = vmul.f32 %v1440_v32, %v1389_v23  ;;  %v1675_v23 = vld [vmem:[%s2405_s18 + $0x8] sm:$0xff] }
 0x3cd   : > { %v1526_v37 = vmul.f32 %v1485_v13, %v1398_v4 }
 0x3cf   : > { %v1445_v7 = vpop.permute.xlu0 %1444  ;;  %v1537_v56 = vpack.c.bf16 %v1526_v37, %v1525_v6  ;;  %v1684_v37 = vld [vmem:[%s2405_s18 + $0x50] sm:$0xff] }
 0x3d0   : > { %v1518_v36 = vmul.f32 %v1445_v7, %v1390_v3  ;;  %v1455_v54 = vpop.permute.xlu1 %1454 }
 0x3d1   : > { %v1520_v33 = vmul.f32 %v1455_v54, %v1392_v55  ;;  %2053 = vmatprep.mubr.msk.bf16.mxu1 %vm573_vm2, %v1537_v56  ;;  %v1682_v55 = vld [vmem:[%s2405_s18 + $0x40] sm:$0xff] }
 0x3d2   : > { %v1533_v11 = vpack.c.bf16 %v1518_v36, %v1517_v9 }
 0x3d3   : > { %v1450_v44 = vpop.permute.xlu0 %1449 }
 0x3d4   : > { %v1519_v26 = vmul.f32 %v1450_v44, %v1391_v47  ;;  %2045 = vmatprep.mubr.msk.bf16.mxu0 %vm573_vm2, %v1533_v11  ;;  %v1495_v48 = vpop.permute.xlu1 %1494  ;;  %v1685_v11 = vld [vmem:[%s2405_s18 + $0x58] sm:$0xff] }
 0x3d5   : > { %v1528_v22 = vmul.f32 %v1495_v48, %v1400_v45  ;;  %v1683_v45 = vld [vmem:[%s2405_s18 + $0x48] sm:$0xff] }
 0x3d6   : > { %v1534_v42 = vpack.c.bf16 %v1520_v33, %v1519_v26 }
 0x3d7   : > { %v1490_v31 = vpop.permute.xlu0 %1489 }
 0x3d8   : > { %v1527_v60 = vmul.f32 %v1490_v31, %v1399_v20  ;;  %2046 = vmatmul.mubr.msk.bf16.vlgmr.msra.gmra.mrb[0].mxu0 %vm573_vm2, %v1534_v42  ;;  %v1465_v0 = vpop.permute.xlu1 %1464 }
 0x3d9   : > { %v1522_v12 = vmul.f32 %v1465_v0, %v1394_v27 }
 0x3da   : > { %v1538_v38 = vpack.c.bf16 %v1528_v22, %v1527_v60  ;;  %v1680_v60 = vld [vmem:[%s2405_s18 + $0x30] sm:$0xff] }
 0x3db   : > { %v1460_v59 = vpop.permute.xlu0 %1459 }
 0x3dc   : > { %v1521_v28 = vmul.f32 %v1460_v59, %v1393_v34  ;;  %2054 = vmatmul.mubr.msk.bf16.vlgmr.msra.gmra.mrb[0].mxu1 %vm573_vm2, %v1538_v38  ;;  %v1505_v16 = vpop.permute.xlu1 %1504  ;;  %v1678_v38 = vld [vmem:[%s2405_s18 + $0x20] sm:$0xff]  ;;  %v1681_v59 = vld [vmem:[%s2405_s18 + $0x38] sm:$0xff] }
 0x3dd   : > { %v1530_v41 = vmul.f32 %v1505_v16, %v1402_v53 }
 0x3de   : > { %v1535_v58 = vpack.c.bf16 %v1522_v12, %v1521_v28 }
 0x3df   : > { %v1500_v62 = vpop.permute.xlu0 %1499 }
 0x3e0   : > { %v1529_v40 = vmul.f32 %v1500_v62, %v1401_v46  ;;  %2049 = vmatprep.mubr.msk.bf16.mxu0 %vm573_vm2, %v1535_v58  ;;  %v1475_v63 = vpop.permute.xlu1 %1474  ;;  %v1679_v58 = vld [vmem:[%s2405_s18 + $0x28] sm:$0xff] }
 0x3e1   : > { %v1524_v50 = vmul.f32 %v1475_v63, %v1396_v10  ;;  %v1686_v63 = vld [vmem:[%s2405_s18 + $0x60] sm:$0xff] }
 0x3e2   : > { %v1539_v24 = vpack.c.bf16 %v1530_v41, %v1529_v40  ;;  %v1688_v40 = vld [vmem:[%s2405_s18 + $0x70] sm:$0xff] }
 0x3e3   : > { %v1470_v14 = vpop.permute.xlu0 %1469 }
 0x3e4   : > { %v1523_v29 = vmul.f32 %v1470_v14, %v1395_v43  ;;  %2057 = vmatprep.mubr.msk.bf16.mxu1 %vm573_vm2, %v1539_v24  ;;  %v1515_v8 = vpop.permute.xlu1 %1514 }
 0x3e5   : > { %v1532_v5 = vmul.f32 %v1515_v8, %v1404_v35  ;;  %v1689_v35 = vld [vmem:[%s2405_s18 + $0x78] sm:$0xff] }
 0x3e6   : > { %v1536_v39 = vpack.c.bf16 %v1524_v50, %v1523_v29 }
 0x3e7   : > { %v1510_v30 = vpop.permute.xlu0 %1509 }
 0x3e8   : > { %v1531_v17 = vmul.f32 %v1510_v30, %v1403_v1  ;;  %2050 = vmatmul.mubr.msk.bf16.gmra.mrb[4].mxu0 %vm573_vm2, %v1536_v39 }
 0x3ea   : > { %v1540_v21 = vpack.c.bf16 %v1532_v5, %v1531_v17  ;;  %v1687_v5 = vld [vmem:[%s2405_s18 + $0x68] sm:$0xff] }
 0x3ec   : > { %2058 = vmatmul.mubr.msk.bf16.gmra.mrb[4].mxu1 %vm573_vm2, %v1540_v21 }
 0x4ab   : > { %v2047_v15 = vpop.f32.mrb[0].mxu0 }
 0x4ac   : > { %v1620_v18 = vadd.f32 %v2047_v15, %v2893_v19  ;;  %v1611_v51 = vpop.f32.mrb[1].mxu0 }
 0x4ad   : > { %v1612_v49 = vadd.f32 %v2893_v19, %v1611_v51  ;;  %v2048_v2 = vpop.f32.mrb[2].mxu0 }
 0x4ae   : > { %v1692_v32 = vadd.f32 %v1676_v61, %v1620_v18  ;;  %v1623_v57 = vadd.f32 %v2048_v2, %v2893_v19  ;;  %v1614_v4 = vpop.f32.mrb[3].mxu0 }
 0x4af   : > { %v1690_v3 = vadd.f32 %v1674_v25, %v1612_v49  ;;  %v1615_v13 = vadd.f32 %v2893_v19, %v1614_v4  ;;  %v2055_v6 = vpop.f32.mrb[0].mxu1 }
 0x4b0   : > { %1709 = vst.msk [vmem:[%s2410_s22 + $0x10] sm:$0xff] %vm1706_vm5, %v1692_v32  ;;  %v1693_v7 = vadd.f32 %v1677_v52, %v1623_v57  ;;  %v1652_v9 = vadd.f32 %v2055_v6, %v2893_v19  ;;  %v1643_v36 = vpop.f32.mrb[1].mxu1 }
 0x4b1   : > { %1707 = vst.msk [vmem:[%s2410_s22] sm:$0xff] %vm1706_vm5, %v1690_v3  ;;  %v1691_v47 = vadd.f32 %v1675_v23, %v1615_v13  ;;  %v1644_v56 = vadd.f32 %v2893_v19, %v1643_v36  ;;  %v2056_v54 = vpop.f32.mrb[2].mxu1 }
 0x4b2   : > { %1710 = vst.msk [vmem:[%s2410_s22 + $0x18] sm:$0xff] %vm1706_vm5, %v1693_v7  ;;  %v1700_v33 = vadd.f32 %v1684_v37, %v1652_v9  ;;  %v1655_v44 = vadd.f32 %v2056_v54, %v2893_v19  ;;  %v1646_v26 = vpop.f32.mrb[3].mxu1 }
 0x4b3   : > { %1708 = vst.msk [vmem:[%s2410_s22 + $0x8] sm:$0xff] %vm1706_vm5, %v1691_v47  ;;  %v1698_v20 = vadd.f32 %v1682_v55, %v1644_v56  ;;  %v1647_v42 = vadd.f32 %v2893_v19, %v1646_v26 }
 0x4b4   : > { %1717 = vst.msk [vmem:[%s2410_s22 + $0x50] sm:$0xff] %vm1706_vm5, %v1700_v33  ;;  %v1701_v48 = vadd.f32 %v1685_v11, %v1655_v44 }
 0x4b5   : > { %1715 = vst.msk [vmem:[%s2410_s22 + $0x40] sm:$0xff] %vm1706_vm5, %v1698_v20  ;;  %v1699_v22 = vadd.f32 %v1683_v45, %v1647_v42 }
 0x4b6   : > { %1718 = vst.msk [vmem:[%s2410_s22 + $0x58] sm:$0xff] %vm1706_vm5, %v1701_v48 }
 0x4b7   : > { %1716 = vst.msk [vmem:[%s2410_s22 + $0x48] sm:$0xff] %vm1706_vm5, %v1699_v22 }
 0x4bb   : > { %v2051_v31 = vpop.f32.mrb[4].mxu0 }
 0x4bc   : > { %v1636_v27 = vadd.f32 %v2051_v31, %v2893_v19  ;;  %v1627_v34 = vpop.f32.mrb[5].mxu0 }
 0x4bd   : > { %v1628_v0 = vadd.f32 %v2893_v19, %v1627_v34  ;;  %v2052_v12 = vpop.f32.mrb[6].mxu0 }
 0x4be   : > { %v1696_v28 = vadd.f32 %v1680_v60, %v1636_v27  ;;  %v1639_v53 = vadd.f32 %v2052_v12, %v2893_v19  ;;  %v1630_v46 = vpop.f32.mrb[7].mxu0 }
 0x4bf   : > { %v1694_v16 = vadd.f32 %v1678_v38, %v1628_v0  ;;  %v1631_v41 = vadd.f32 %v2893_v19, %v1630_v46  ;;  %v2059_v62 = vpop.f32.mrb[4].mxu1 }
 0x4c0   : > { %1713 = vst.msk [vmem:[%s2410_s22 + $0x30] sm:$0xff] %vm1706_vm5, %v1696_v28  ;;  %v1697_v10 = vadd.f32 %v1681_v59, %v1639_v53  ;;  %v1668_v43 = vadd.f32 %v2059_v62, %v2893_v19  ;;  %v1659_v24 = vpop.f32.mrb[5].mxu1 }
 0x4c1   : > { %1711 = vst.msk [vmem:[%s2410_s22 + $0x20] sm:$0xff] %vm1706_vm5, %v1694_v16  ;;  %v1695_v50 = vadd.f32 %v1679_v58, %v1631_v41  ;;  %v1660_v14 = vadd.f32 %v2893_v19, %v1659_v24  ;;  %v2060_v29 = vpop.f32.mrb[6].mxu1 }
 0x4c2   : > { %1714 = vst.msk [vmem:[%s2410_s22 + $0x38] sm:$0xff] %vm1706_vm5, %v1697_v10  ;;  %v1704_v1 = vadd.f32 %v1688_v40, %v1668_v43  ;;  %v1671_v39 = vadd.f32 %v2060_v29, %v2893_v19  ;;  %v1662_v8 = vpop.f32.mrb[7].mxu1 }
 0x4c3   : > { %1712 = vst.msk [vmem:[%s2410_s22 + $0x28] sm:$0xff] %vm1706_vm5, %v1695_v50  ;;  %v1702_v30 = vadd.f32 %v1686_v63, %v1660_v14  ;;  %v1663_v17 = vadd.f32 %v2893_v19, %v1662_v8 }
 0x4c4   : > { %1721 = vst.msk [vmem:[%s2410_s22 + $0x70] sm:$0xff] %vm1706_vm5, %v1704_v1  ;;  %v1705_v21 = vadd.f32 %v1689_v35, %v1671_v39 }
 0x4c5   : > { %1719 = vst.msk [vmem:[%s2410_s22 + $0x60] sm:$0xff] %vm1706_vm5, %v1702_v30  ;;  %v1703_v15 = vadd.f32 %v1687_v5, %v1663_v17 }
 0x4c6   : > { %1722 = vst.msk [vmem:[%s2410_s22 + $0x78] sm:$0xff] %vm1706_vm5, %v1705_v21 }
 0x4c7   : > { %1720 = vst.msk [vmem:[%s2410_s22 + $0x68] sm:$0xff] %vm1706_vm5, %v1703_v15 }
 0x4c8 PF: > { %s16_s27 = sadd.s32 1, %s2311_s27   ;;  %s2989_s9 = sld [smem:[#allocation5_spill]] }
 0x4c9   : > { %p13_p11 = scmp.ge.s32.totalorder %s16_s27, 10   ;;  %s2990_s12 = sld [smem:[#allocation6_spill]] }
 0x4ca   : > { %s2991_s21 = smov %s2299_s24  ;;  %s2992_s22 = smov %s2303_s25 }
 0x4cb   : > { %s2993_s23 = smov %s2307_s26  ;;  %s2994_s24 = smov %s2998_s28 }
 0x4cc   :  { %15 = sbr.rel (!%p13_p11) target bundleno = 4 (0x4), region = 91 }
 0x4ce   : > { %s2995_s25 = smov %s2989_s9 }
 0x4cf   : > { %s2996_s26 = smov %s2990_s12 }

// kernel: nl_block_forward.2
= control target key start
LH: loop header
LB: loop body
LE: loop exit
PB: predicated region body
PF: predicated region fallthrough
CT: control target
= control target key end

     0   :  { %s2587_s30 = smov 0   ;;  %s2589_s10 = smov 0   ;;  %s3186_s0 = inlined_call_operand.vmem [shape: f32[2,256,4], index: 0, kind: input, shape index: {}]   ;;  %s3187_s1 = inlined_call_operand.vmem [shape: f32[4,2], index: 1, kind: input, shape index: {}]   ;;  %s3188_s2 = inlined_call_operand.vmem [shape: f32[1,2], index: 2, kind: input, shape index: {}]   ;;  %s3189_s3 = inlined_call_operand.vmem [shape: f32[4,2], index: 3, kind: input, shape index: {}]   ;;  %s3190_s4 = inlined_call_operand.vmem [shape: f32[1,2], index: 4, kind: input, shape index: {}]   ;;  %s3191_s5 = inlined_call_operand.vmem [shape: f32[4,2], index: 5, kind: input, shape index: {}]   ;;  %s3192_s6 = inlined_call_operand.vmem [shape: f32[1,2], index: 6, kind: input, shape index: {}]   ;;  %s3193_s7 = inlined_call_operand.vmem [shape: bf16[2,256,2], index: 7, kind: output, shape index: {0}]   ;;  %s3194_s8 = inlined_call_operand.vmem [shape: bf16[2,256,2], index: 8, kind: output, shape index: {1}]   ;;  %s3195_s9 = inlined_call_operand.vmem [shape: bf16[2,256,2], index: 9, kind: output, shape index: {2}]  }
   0x1   :  { %s2591_s11 = smov 0  }
   0x2 LB: > { %s32_s12 = sadd.s32 1, %s2531_s10  ;;  %p1929_p0 = scmp.ge.s32.totalorder %s2535_s11, 1  ;;  %s2535_s11 = sphi %s2591_s11, %s20_s11   ;;  %s2531_s10 = sphi %s2589_s10, %s3197_s10   ;;  %s2527_s30 = sphi %s2587_s30, %s3196_s30  }
   0x3   : > { %p34_p1 = scmp.ge.s32.totalorder %s32_s12, 2  ;;  %p317_p2 = scmp.lt.s32.totalorder %s2535_s11, 3 }
   0x5   : > { %s3199_s12 = smov (%p34_p1, %s32_s12), 0  ;;  %p318_p3 = pnand %p1929_p0, %p317_p2 }
   0x6   : > { %v451_v0 = vld [vmem:[%s3187_s1] sm:$0xf] (!%p318_p3)  ;;  %vm556_vm0 = vcmask (!%p318_p3), 1043456   ;;  %p380_p4 = scmp.lt.s32.totalorder (!%p318_p3), %s2527_s30, 1  ;;  %vm459_vm1 = vcmask (!%p318_p3), 31744   ;;  %vm913_vm2 = vcmask (!%p318_p3), 11264  }
   0x7   : > { %321 = sbr.rel (%p318_p3) target bundleno = 330 (0x14a), region = 48  ;;  %2337 = vmatprep.subr.msk.mxu0 (!%p318_p3), %vm556_vm0, %v451_v0  ;;  %2487 = vmatprep.subr.msk.mxu1 (!%p318_p3), %vm556_vm0, %v451_v0  ;;  %v946_v1 = vld [vmem:[%s3189_s3] sm:$0xf] (!%p318_p3) }
   0x8   : > { %v1342_v2 = vld [vmem:[%s3191_s5] sm:$0xf] (!%p318_p3)  ;;  %2338 = vmatpush3.msk.msra.mxu0 (!%p318_p3), %vm556_vm0, %v451_v0  ;;  %2488 = vmatpush3.msk.msra.mxu1 (!%p318_p3), %vm556_vm0, %v451_v0 }
   0x9   : > { %2387 = vmatprep.subr.msk.mxu1 (!%p318_p3), %vm556_vm0, %v946_v1  ;;  %2437 = vmatprep.subr.msk.mxu0 (!%p318_p3), %vm556_vm0, %v1342_v2  ;;  %v2856_v35 = vld [vmem:[%s3188_s2] ss:$0 sm:$0xff] (!%p318_p3) }
   0xe   : > { %s3201_s30 = smov (!%p380_p4, %s2527_s30), 1 }
   0xf   : > { %s2138_s19 = sshll.u32 %s3201_s30, 8  ;;  %s2859_s25 = sshll.u32 %s3201_s30, 7 }
  0x10   : > { %s2626_s22 = scalar_lea.vmem %s3186_s0, %s2138_s19  ;;  %s2867_s28 = scalar_lea.vmem %s3193_s7, %s2859_s25 }
  0x11   : > { %v2629_v3 = vld [vmem:[%s2626_s22] sm:$0xff]  ;;  %v2635_v5 = vld [vmem:[%s2626_s22 + $0x8] sm:$0xff]  ;;  %v2645_v7 = vld [vmem:[%s2626_s22 + $0x10] sm:$0xff]  ;;  %s2979_s17 = scalar_lea.vmem %s3194_s8, %s2859_s25  ;;  %s2985_s20 = scalar_lea.vmem %s3195_s9, %s2859_s25 }
  0x12   : > { %v2632_v4 = vld [vmem:[%s2626_s22 + $0x80] sm:$0xff]  ;;  %2339 = vmatprep.mubr.msk.f32.mxu0 %vm459_vm1, %v2629_v3  ;;  %v2642_v6 = vld [vmem:[%s2626_s22 + $0x88] sm:$0xff]  ;;  %v2648_v8 = vld [vmem:[%s2626_s22 + $0x90] sm:$0xff] }
  0x13   : > { %2363 = vmatprep.mubr.msk.f32.mxu1 %vm459_vm1, %v2632_v4  ;;  %2340 = vmatmul.mubr.msk.f32.vlgmr.msra.gmra.mrb[0].mxu0 %vm459_vm1, %v2635_v5  ;;  %v422_v9 = vld [vmem:[%s2626_s22 + $0x18] sm:$0xff]  ;;  %v423_v11 = vld [vmem:[%s2626_s22 + $0x20] sm:$0xff]  ;;  %v424_v13 = vld [vmem:[%s2626_s22 + $0x28] sm:$0xff] }
  0x14   : > { %2364 = vmatmul.mubr.msk.f32.vlgmr.msra.gmra.mrb[0].mxu1 %vm459_vm1, %v2642_v6  ;;  %2438 = vmatpush3.msk.msra.mxu0 %vm556_vm0, %v1342_v2  ;;  %v2658_v10 = vld [vmem:[%s2626_s22 + $0x98] sm:$0xff]  ;;  %v2666_v12 = vld [vmem:[%s2626_s22 + $0xa0] sm:$0xff]  ;;  %v2676_v14 = vld [vmem:[%s2626_s22 + $0xa8] sm:$0xff] }
  0x15   : > { %2388 = vmatpush3.msk.msra.mxu1 %vm556_vm0, %v946_v1  ;;  %2342 = vmatprep.mubr.msk.f32.mxu0 %vm459_vm1, %v2645_v7  ;;  %v425_v15 = vld [vmem:[%s2626_s22 + $0x30] sm:$0xff]  ;;  %v426_v17 = vld [vmem:[%s2626_s22 + $0x38] sm:$0xff]  ;;  %v427_v19 = vld [vmem:[%s2626_s22 + $0x40] sm:$0xff] }
  0x16   : > { %2366 = vmatprep.mubr.msk.f32.mxu1 %vm459_vm1, %v2648_v8  ;;  %v2680_v16 = vld [vmem:[%s2626_s22 + $0xb0] sm:$0xff]  ;;  %v2690_v18 = vld [vmem:[%s2626_s22 + $0xb8] sm:$0xff]  ;;  %v2694_v20 = vld [vmem:[%s2626_s22 + $0xc0] sm:$0xff] }
  0x17   : > { %2343 = vmatmul.mubr.msk.f32.gmra.mrb[2].mxu0 %vm459_vm1, %v422_v9  ;;  %v428_v21 = vld [vmem:[%s2626_s22 + $0x48] sm:$0xff]  ;;  %v429_v23 = vld [vmem:[%s2626_s22 + $0x50] sm:$0xff]  ;;  %v430_v25 = vld [vmem:[%s2626_s22 + $0x58] sm:$0xff] }
  0x18   : > { %2367 = vmatmul.mubr.msk.f32.gmra.mrb[2].mxu1 %vm459_vm1, %v2658_v10  ;;  %2345 = vmatprep.mubr.msk.f32.mxu0 %vm459_vm1, %v423_v11  ;;  %v2704_v22 = vld [vmem:[%s2626_s22 + $0xc8] sm:$0xff]  ;;  %v2708_v24 = vld [vmem:[%s2626_s22 + $0xd0] sm:$0xff]  ;;  %v2718_v26 = vld [vmem:[%s2626_s22 + $0xd8] sm:$0xff] }
  0x19   : > { %2369 = vmatprep.mubr.msk.f32.mxu1 %vm459_vm1, %v2666_v12  ;;  %v431_v27 = vld [vmem:[%s2626_s22 + $0x60] sm:$0xff]  ;;  %v432_v29 = vld [vmem:[%s2626_s22 + $0x68] sm:$0xff]  ;;  %v433_v31 = vld [vmem:[%s2626_s22 + $0x70] sm:$0xff] }
  0x1a   : > { %v2722_v28 = vld [vmem:[%s2626_s22 + $0xe0] sm:$0xff]  ;;  %v2732_v30 = vld [vmem:[%s2626_s22 + $0xe8] sm:$0xff]  ;;  %v2736_v32 = vld [vmem:[%s2626_s22 + $0xf0] sm:$0xff] }
  0x1b   : > { %2346 = vmatmul.mubr.msk.f32.gmra.mrb[4].mxu0 %vm459_vm1, %v424_v13  ;;  %v434_v33 = vld [vmem:[%s2626_s22 + $0x78] sm:$0xff] }
  0x1c   : > { %2370 = vmatmul.mubr.msk.f32.gmra.mrb[4].mxu1 %vm459_vm1, %v2676_v14  ;;  %2348 = vmatprep.mubr.msk.f32.mxu0 %vm459_vm1, %v425_v15  ;;  %v2746_v34 = vld [vmem:[%s2626_s22 + $0xf8] sm:$0xff] }
  0x1d   : > { %2372 = vmatprep.mubr.msk.f32.mxu1 %vm459_vm1, %v2680_v16 }
  0x1f   : > { %2349 = vmatmul.mubr.msk.f32.gmra.mrb[6].mxu0 %vm459_vm1, %v426_v17 }
  0x20   : > { %2373 = vmatmul.mubr.msk.f32.gmra.mrb[6].mxu1 %vm459_vm1, %v2690_v18  ;;  %2351 = vmatprep.mubr.msk.f32.mxu0 %vm459_vm1, %v427_v19 }
  0x21   : > { %2375 = vmatprep.mubr.msk.f32.mxu1 %vm459_vm1, %v2694_v20 }
  0x23   : > { %2352 = vmatmul.mubr.msk.f32.gmra.mrb[8].mxu0 %vm459_vm1, %v428_v21 }
  0x24   : > { %2376 = vmatmul.mubr.msk.f32.gmra.mrb[8].mxu1 %vm459_vm1, %v2704_v22  ;;  %2354 = vmatprep.mubr.msk.f32.mxu0 %vm459_vm1, %v429_v23 }
  0x25   : > { %2378 = vmatprep.mubr.msk.f32.mxu1 %vm459_vm1, %v2708_v24 }
  0x27   : > { %2355 = vmatmul.mubr.msk.f32.gmra.mrb[10].mxu0 %vm459_vm1, %v430_v25 }
  0x28   : > { %2379 = vmatmul.mubr.msk.f32.gmra.mrb[10].mxu1 %vm459_vm1, %v2718_v26  ;;  %2357 = vmatprep.mubr.msk.f32.mxu0 %vm459_vm1, %v431_v27 }
  0x29   : > { %2381 = vmatprep.mubr.msk.f32.mxu1 %vm459_vm1, %v2722_v28 }
  0x2b   : > { %2358 = vmatmul.mubr.msk.f32.gmra.mrb[12].mxu0 %vm459_vm1, %v432_v29 }
  0x2c   : > { %2382 = vmatmul.mubr.msk.f32.gmra.mrb[12].mxu1 %vm459_vm1, %v2732_v30  ;;  %2360 = vmatprep.mubr.msk.f32.mxu0 %vm459_vm1, %v433_v31 }
  0x2d   : > { %2384 = vmatprep.mubr.msk.f32.mxu1 %vm459_vm1, %v2736_v32 }
  0x2f   : > { %2361 = vmatmul.mubr.msk.f32.gmra.mrb[14].mxu0 %vm459_vm1, %v434_v33 }
  0x30   : > { %2385 = vmatmul.mubr.msk.f32.gmra.mrb[14].mxu1 %vm459_vm1, %v2746_v34  ;;  %2439 = vmatprep.mubr.msk.f32.mxu0 %vm459_vm1, %v2629_v3 }
  0x31   : > { %2389 = vmatprep.mubr.msk.f32.mxu1 %vm459_vm1, %v2629_v3 }
  0x33   : > { %2440 = vmatmul.mubr.msk.f32.vlgmr.msra.gmra.mrb[16].mxu0 %vm459_vm1, %v2635_v5 }
  0x34   : > { %2390 = vmatmul.mubr.msk.f32.vlgmr.msra.gmra.mrb[16].mxu1 %vm459_vm1, %v2635_v5  ;;  %2442 = vmatprep.mubr.msk.f32.mxu0 %vm459_vm1, %v2645_v7 }
  0x35   : > { %2392 = vmatprep.mubr.msk.f32.mxu1 %vm459_vm1, %v2645_v7 }
  0x37   : > { %2443 = vmatmul.mubr.msk.f32.gmra.mrb[18].mxu0 %vm459_vm1, %v422_v9 }
  0x38   : > { %2393 = vmatmul.mubr.msk.f32.gmra.mrb[18].mxu1 %vm459_vm1, %v422_v9  ;;  %2445 = vmatprep.mubr.msk.f32.mxu0 %vm459_vm1, %v423_v11 }
  0x39   : > { %2395 = vmatprep.mubr.msk.f32.mxu1 %vm459_vm1, %v423_v11 }
  0x3b   : > { %2446 = vmatmul.mubr.msk.f32.gmra.mrb[20].mxu0 %vm459_vm1, %v424_v13 }
  0x3c   : > { %2396 = vmatmul.mubr.msk.f32.gmra.mrb[20].mxu1 %vm459_vm1, %v424_v13  ;;  %2448 = vmatprep.mubr.msk.f32.mxu0 %vm459_vm1, %v425_v15 }
  0x3d   : > { %2398 = vmatprep.mubr.msk.f32.mxu1 %vm459_vm1, %v425_v15 }
  0x3f   : > { %2449 = vmatmul.mubr.msk.f32.gmra.mrb[22].mxu0 %vm459_vm1, %v426_v17 }
  0x40   : > { %2399 = vmatmul.mubr.msk.f32.gmra.mrb[22].mxu1 %vm459_vm1, %v426_v17  ;;  %2451 = vmatprep.mubr.msk.f32.mxu0 %vm459_vm1, %v427_v19 }
  0x41   : > { %2401 = vmatprep.mubr.msk.f32.mxu1 %vm459_vm1, %v427_v19 }
  0x43   : > { %2452 = vmatmul.mubr.msk.f32.gmra.mrb[24].mxu0 %vm459_vm1, %v428_v21 }
  0x44   : > { %2402 = vmatmul.mubr.msk.f32.gmra.mrb[24].mxu1 %vm459_vm1, %v428_v21  ;;  %2454 = vmatprep.mubr.msk.f32.mxu0 %vm459_vm1, %v429_v23 }
  0x45   : > { %2404 = vmatprep.mubr.msk.f32.mxu1 %vm459_vm1, %v429_v23 }
  0x47   : > { %2455 = vmatmul.mubr.msk.f32.gmra.mrb[26].mxu0 %vm459_vm1, %v430_v25 }
  0x48   : > { %2405 = vmatmul.mubr.msk.f32.gmra.mrb[26].mxu1 %vm459_vm1, %v430_v25  ;;  %2457 = vmatprep.mubr.msk.f32.mxu0 %vm459_vm1, %v431_v27 }
  0x49   : > { %2407 = vmatprep.mubr.msk.f32.mxu1 %vm459_vm1, %v431_v27 }
  0x4b   : > { %2458 = vmatmul.mubr.msk.f32.gmra.mrb[28].mxu0 %vm459_vm1, %v432_v29 }
  0x4c   : > { %2408 = vmatmul.mubr.msk.f32.gmra.mrb[28].mxu1 %vm459_vm1, %v432_v29  ;;  %2460 = vmatprep.mubr.msk.f32.mxu0 %vm459_vm1, %v433_v31 }
  0x4d   : > { %2410 = vmatprep.mubr.msk.f32.mxu1 %vm459_vm1, %v433_v31 }
  0x4f   : > { %2461 = vmatmul.mubr.msk.f32.gmra.mrb[30].mxu0 %vm459_vm1, %v434_v33 }
  0x50   : > { %2411 = vmatmul.mubr.msk.f32.gmra.mrb[30].mxu1 %vm459_vm1, %v434_v33  ;;  %2463 = vmatprep.mubr.msk.f32.mxu0 %vm459_vm1, %v2632_v4 }
  0x51   : > { %2413 = vmatprep.mubr.msk.f32.mxu1 %vm459_vm1, %v2632_v4 }
  0x53   : > { %2464 = vmatmul.mubr.msk.f32.gmra.mrb[32].mxu0 %vm459_vm1, %v2642_v6 }
  0x54   : > { %2414 = vmatmul.mubr.msk.f32.gmra.mrb[32].mxu1 %vm459_vm1, %v2642_v6  ;;  %2466 = vmatprep.mubr.msk.f32.mxu0 %vm459_vm1, %v2648_v8 }
  0x55   : > { %2416 = vmatprep.mubr.msk.f32.mxu1 %vm459_vm1, %v2648_v8 }
  0x57   : > { %2467 = vmatmul.mubr.msk.f32.gmra.mrb[34].mxu0 %vm459_vm1, %v2658_v10 }
  0x58   : > { %2417 = vmatmul.mubr.msk.f32.gmra.mrb[34].mxu1 %vm459_vm1, %v2658_v10  ;;  %2469 = vmatprep.mubr.msk.f32.mxu0 %vm459_vm1, %v2666_v12 }
  0x59   : > { %2419 = vmatprep.mubr.msk.f32.mxu1 %vm459_vm1, %v2666_v12 }
  0x5b   : > { %2470 = vmatmul.mubr.msk.f32.gmra.mrb[36].mxu0 %vm459_vm1, %v2676_v14 }
  0x5c   : > { %2420 = vmatmul.mubr.msk.f32.gmra.mrb[36].mxu1 %vm459_vm1, %v2676_v14  ;;  %2472 = vmatprep.mubr.msk.f32.mxu0 %vm459_vm1, %v2680_v16 }
  0x5d   : > { %2422 = vmatprep.mubr.msk.f32.mxu1 %vm459_vm1, %v2680_v16 }
  0x5f   : > { %2473 = vmatmul.mubr.msk.f32.gmra.mrb[38].mxu0 %vm459_vm1, %v2690_v18 }
  0x60   : > { %2423 = vmatmul.mubr.msk.f32.gmra.mrb[38].mxu1 %vm459_vm1, %v2690_v18  ;;  %2475 = vmatprep.mubr.msk.f32.mxu0 %vm459_vm1, %v2694_v20 }
  0x61   : > { %2425 = vmatprep.mubr.msk.f32.mxu1 %vm459_vm1, %v2694_v20 }
  0x63   : > { %2476 = vmatmul.mubr.msk.f32.gmra.mrb[40].mxu0 %vm459_vm1, %v2704_v22 }
  0x64   : > { %2426 = vmatmul.mubr.msk.f32.gmra.mrb[40].mxu1 %vm459_vm1, %v2704_v22  ;;  %2478 = vmatprep.mubr.msk.f32.mxu0 %vm459_vm1, %v2708_v24 }
  0x65   : > { %2428 = vmatprep.mubr.msk.f32.mxu1 %vm459_vm1, %v2708_v24 }
  0x67   : > { %2479 = vmatmul.mubr.msk.f32.gmra.mrb[42].mxu0 %vm459_vm1, %v2718_v26 }
  0x68   : > { %2429 = vmatmul.mubr.msk.f32.gmra.mrb[42].mxu1 %vm459_vm1, %v2718_v26  ;;  %2481 = vmatprep.mubr.msk.f32.mxu0 %vm459_vm1, %v2722_v28 }
  0x69   : > { %2431 = vmatprep.mubr.msk.f32.mxu1 %vm459_vm1, %v2722_v28 }
  0x6b   : > { %2482 = vmatmul.mubr.msk.f32.gmra.mrb[44].mxu0 %vm459_vm1, %v2732_v30 }
  0x6c   : > { %2432 = vmatmul.mubr.msk.f32.gmra.mrb[44].mxu1 %vm459_vm1, %v2732_v30  ;;  %2484 = vmatprep.mubr.msk.f32.mxu0 %vm459_vm1, %v2736_v32 }
  0x6d   : > { %2434 = vmatprep.mubr.msk.f32.mxu1 %vm459_vm1, %v2736_v32 }
  0x6f   : > { %2485 = vmatmul.mubr.msk.f32.gmra.mrb[46].mxu0 %vm459_vm1, %v2746_v34 }
  0x70   : > { %2435 = vmatmul.mubr.msk.f32.gmra.mrb[46].mxu1 %vm459_vm1, %v2746_v34 }
  0xe6   : > { %v2341_v36 = vpop.f32.mrb[0].mxu0 }
  0xe7   : > { %v2365_v37 = vpop.f32.mrb[0].mxu1  ;;  %v632_v38 = vadd.f32 %v2341_v36, %v2856_v35  ;;  %v626_v40 = vpop.f32.mrb[1].mxu0 }
  0xe8   : > { %v712_v39 = vadd.f32 %v2365_v37, %v2856_v35  ;;  %v706_v41 = vpop.f32.mrb[1].mxu1  ;;  %v627_v42 = vadd.f32 %v2856_v35, %v626_v40 }
  0xe9   : > { %v707_v43 = vadd.f32 %v2856_v35, %v706_v41  ;;  %v2143_v44 = vpack.c.bf16 %v632_v38, %v632_v38 }
  0xea   : > { %v2159_v45 = vpack.c.bf16 %v712_v39, %v712_v39  ;;  %v2142_v46 = vpack.c.bf16 %v627_v42, %v627_v42  ;;  %v2344_v48 = vpop.f32.mrb[2].mxu0 }
  0xeb   : > { %v2158_v47 = vpack.c.bf16 %v707_v43, %v707_v43  ;;  %v2368_v49 = vpop.f32.mrb[2].mxu1  ;;  %915 = vst.msk [vmem:[%s2867_s28 + $0x4] sm:$0xf] %vm913_vm2, %v2143_v44  ;;  %v642_v50 = vadd.f32 %v2344_v48, %v2856_v35  ;;  %v636_v52 = vpop.f32.mrb[3].mxu0 }
  0xec   : > { %931 = vst.msk [vmem:[%s2867_s28 + $0x44] sm:$0xf] %vm913_vm2, %v2159_v45  ;;  %v722_v51 = vadd.f32 %v2368_v49, %v2856_v35  ;;  %v716_v53 = vpop.f32.mrb[3].mxu1  ;;  %914 = vst.msk [vmem:[%s2867_s28] sm:$0xf] %vm913_vm2, %v2142_v46  ;;  %v637_v54 = vadd.f32 %v2856_v35, %v636_v52 }
  0xed   : > { %930 = vst.msk [vmem:[%s2867_s28 + $0x40] sm:$0xf] %vm913_vm2, %v2158_v47  ;;  %v717_v55 = vadd.f32 %v2856_v35, %v716_v53  ;;  %v2145_v56 = vpack.c.bf16 %v642_v50, %v642_v50 }
  0xee   : > { %v2161_v57 = vpack.c.bf16 %v722_v51, %v722_v51  ;;  %v2144_v58 = vpack.c.bf16 %v637_v54, %v637_v54  ;;  %v2347_v60 = vpop.f32.mrb[4].mxu0 }
  0xef   : > { %v2160_v59 = vpack.c.bf16 %v717_v55, %v717_v55  ;;  %v2371_v61 = vpop.f32.mrb[4].mxu1  ;;  %917 = vst.msk [vmem:[%s2867_s28 + $0xc] sm:$0xf] %vm913_vm2, %v2145_v56  ;;  %v652_v62 = vadd.f32 %v2347_v60, %v2856_v35  ;;  %v646_v0 = vpop.f32.mrb[5].mxu0 }
  0xf0   : > { %933 = vst.msk [vmem:[%s2867_s28 + $0x4c] sm:$0xf] %vm913_vm2, %v2161_v57  ;;  %v732_v63 = vadd.f32 %v2371_v61, %v2856_v35  ;;  %v726_v1 = vpop.f32.mrb[5].mxu1  ;;  %916 = vst.msk [vmem:[%s2867_s28 + $0x8] sm:$0xf] %vm913_vm2, %v2144_v58  ;;  %v647_v2 = vadd.f32 %v2856_v35, %v646_v0 }
  0xf1   : > { %932 = vst.msk [vmem:[%s2867_s28 + $0x48] sm:$0xf] %vm913_vm2, %v2160_v59  ;;  %v727_v3 = vadd.f32 %v2856_v35, %v726_v1  ;;  %v2147_v4 = vpack.c.bf16 %v652_v62, %v652_v62  ;;  %v2958_v1 = vld [vmem:[%s3190_s4] ss:$0 sm:$0xff] }
  0xf2   : > { %v2163_v5 = vpack.c.bf16 %v732_v63, %v732_v63  ;;  %v2146_v6 = vpack.c.bf16 %v647_v2, %v647_v2  ;;  %v2350_v8 = vpop.f32.mrb[6].mxu0  ;;  %v2963_v2 = vld [vmem:[%s3192_s6] ss:$0 sm:$0xff] }
  0xf3   : > { %v2162_v7 = vpack.c.bf16 %v727_v3, %v727_v3  ;;  %v2374_v9 = vpop.f32.mrb[6].mxu1  ;;  %919 = vst.msk [vmem:[%s2867_s28 + $0x14] sm:$0xf] %vm913_vm2, %v2147_v4  ;;  %v662_v10 = vadd.f32 %v2350_v8, %v2856_v35  ;;  %v656_v12 = vpop.f32.mrb[7].mxu0 }
  0xf4   : > { %935 = vst.msk [vmem:[%s2867_s28 + $0x54] sm:$0xf] %vm913_vm2, %v2163_v5  ;;  %v742_v11 = vadd.f32 %v2374_v9, %v2856_v35  ;;  %v736_v13 = vpop.f32.mrb[7].mxu1  ;;  %918 = vst.msk [vmem:[%s2867_s28 + $0x10] sm:$0xf] %vm913_vm2, %v2146_v6  ;;  %v657_v14 = vadd.f32 %v2856_v35, %v656_v12 }
  0xf5   : > { %934 = vst.msk [vmem:[%s2867_s28 + $0x50] sm:$0xf] %vm913_vm2, %v2162_v7  ;;  %v737_v15 = vadd.f32 %v2856_v35, %v736_v13  ;;  %v2149_v16 = vpack.c.bf16 %v662_v10, %v662_v10 }
  0xf6   : > { %v2165_v17 = vpack.c.bf16 %v742_v11, %v742_v11  ;;  %v2148_v18 = vpack.c.bf16 %v657_v14, %v657_v14  ;;  %v2353_v20 = vpop.f32.mrb[8].mxu0 }
  0xf7   : > { %v2164_v19 = vpack.c.bf16 %v737_v15, %v737_v15  ;;  %v2377_v21 = vpop.f32.mrb[8].mxu1  ;;  %921 = vst.msk [vmem:[%s2867_s28 + $0x1c] sm:$0xf] %vm913_vm2, %v2149_v16  ;;  %v672_v22 = vadd.f32 %v2353_v20, %v2856_v35  ;;  %v666_v24 = vpop.f32.mrb[9].mxu0 }
  0xf8   : > { %937 = vst.msk [vmem:[%s2867_s28 + $0x5c] sm:$0xf] %vm913_vm2, %v2165_v17  ;;  %v752_v23 = vadd.f32 %v2377_v21, %v2856_v35  ;;  %v746_v25 = vpop.f32.mrb[9].mxu1  ;;  %920 = vst.msk [vmem:[%s2867_s28 + $0x18] sm:$0xf] %vm913_vm2, %v2148_v18  ;;  %v667_v26 = vadd.f32 %v2856_v35, %v666_v24 }
  0xf9   : > { %936 = vst.msk [vmem:[%s2867_s28 + $0x58] sm:$0xf] %vm913_vm2, %v2164_v19  ;;  %v747_v27 = vadd.f32 %v2856_v35, %v746_v25  ;;  %v2151_v28 = vpack.c.bf16 %v672_v22, %v672_v22 }
  0xfa   : > { %v2167_v29 = vpack.c.bf16 %v752_v23, %v752_v23  ;;  %v2150_v30 = vpack.c.bf16 %v667_v26, %v667_v26  ;;  %v2356_v32 = vpop.f32.mrb[10].mxu0 }
  0xfb   : > { %v2166_v31 = vpack.c.bf16 %v747_v27, %v747_v27  ;;  %v2380_v33 = vpop.f32.mrb[10].mxu1  ;;  %923 = vst.msk [vmem:[%s2867_s28 + $0x24] sm:$0xf] %vm913_vm2, %v2151_v28  ;;  %v682_v34 = vadd.f32 %v2356_v32, %v2856_v35  ;;  %v676_v37 = vpop.f32.mrb[11].mxu0 }
  0xfc   : > { %939 = vst.msk [vmem:[%s2867_s28 + $0x64] sm:$0xf] %vm913_vm2, %v2167_v29  ;;  %v762_v36 = vadd.f32 %v2380_v33, %v2856_v35  ;;  %v756_v38 = vpop.f32.mrb[11].mxu1  ;;  %922 = vst.msk [vmem:[%s2867_s28 + $0x20] sm:$0xf] %vm913_vm2, %v2150_v30  ;;  %v677_v39 = vadd.f32 %v2856_v35, %v676_v37 }
  0xfd   : > { %938 = vst.msk [vmem:[%s2867_s28 + $0x60] sm:$0xf] %vm913_vm2, %v2166_v31  ;;  %v757_v40 = vadd.f32 %v2856_v35, %v756_v38  ;;  %v2153_v41 = vpack.c.bf16 %v682_v34, %v682_v34 }
  0xfe   : > { %v2169_v42 = vpack.c.bf16 %v762_v36, %v762_v36  ;;  %v2152_v43 = vpack.c.bf16 %v677_v39, %v677_v39  ;;  %v2359_v45 = vpop.f32.mrb[12].mxu0 }
  0xff   : > { %v2168_v44 = vpack.c.bf16 %v757_v40, %v757_v40  ;;  %v2383_v46 = vpop.f32.mrb[12].mxu1  ;;  %925 = vst.msk [vmem:[%s2867_s28 + $0x2c] sm:$0xf] %vm913_vm2, %v2153_v41  ;;  %v692_v47 = vadd.f32 %v2359_v45, %v2856_v35  ;;  %v686_v49 = vpop.f32.mrb[13].mxu0 }
 0x100   : > { %941 = vst.msk [vmem:[%s2867_s28 + $0x6c] sm:$0xf] %vm913_vm2, %v2169_v42  ;;  %v772_v48 = vadd.f32 %v2383_v46, %v2856_v35  ;;  %v766_v50 = vpop.f32.mrb[13].mxu1  ;;  %924 = vst.msk [vmem:[%s2867_s28 + $0x28] sm:$0xf] %vm913_vm2, %v2152_v43  ;;  %v687_v51 = vadd.f32 %v2856_v35, %v686_v49 }
 0x101   : > { %940 = vst.msk [vmem:[%s2867_s28 + $0x68] sm:$0xf] %vm913_vm2, %v2168_v44  ;;  %v767_v52 = vadd.f32 %v2856_v35, %v766_v50  ;;  %v2155_v53 = vpack.c.bf16 %v692_v47, %v692_v47 }
 0x102   : > { %v2171_v54 = vpack.c.bf16 %v772_v48, %v772_v48  ;;  %v2154_v55 = vpack.c.bf16 %v687_v51, %v687_v51  ;;  %v2362_v57 = vpop.f32.mrb[14].mxu0 }
 0x103   : > { %v2170_v56 = vpack.c.bf16 %v767_v52, %v767_v52  ;;  %v2386_v58 = vpop.f32.mrb[14].mxu1  ;;  %927 = vst.msk [vmem:[%s2867_s28 + $0x34] sm:$0xf] %vm913_vm2, %v2155_v53  ;;  %v702_v59 = vadd.f32 %v2362_v57, %v2856_v35  ;;  %v696_v61 = vpop.f32.mrb[15].mxu0 }
 0x104   : > { %943 = vst.msk [vmem:[%s2867_s28 + $0x74] sm:$0xf] %vm913_vm2, %v2171_v54  ;;  %v782_v60 = vadd.f32 %v2386_v58, %v2856_v35  ;;  %v776_v62 = vpop.f32.mrb[15].mxu1  ;;  %926 = vst.msk [vmem:[%s2867_s28 + $0x30] sm:$0xf] %vm913_vm2, %v2154_v55  ;;  %v697_v63 = vadd.f32 %v2856_v35, %v696_v61 }
 0x105   : > { %942 = vst.msk [vmem:[%s2867_s28 + $0x70] sm:$0xf] %vm913_vm2, %v2170_v56  ;;  %v777_v0 = vadd.f32 %v2856_v35, %v776_v62  ;;  %v2157_v3 = vpack.c.bf16 %v702_v59, %v702_v59 }
 0x106   : > { %v2173_v4 = vpack.c.bf16 %v782_v60, %v782_v60  ;;  %v2156_v5 = vpack.c.bf16 %v697_v63, %v697_v63  ;;  %v2441_v8 = vpop.f32.mrb[16].mxu0 }
 0x107   : > { %v2172_v6 = vpack.c.bf16 %v777_v0, %v777_v0  ;;  %v2391_v7 = vpop.f32.mrb[16].mxu1  ;;  %929 = vst.msk [vmem:[%s2867_s28 + $0x3c] sm:$0xf] %vm913_vm2, %v2157_v3  ;;  %v1425_v9 = vadd.f32 %v2441_v8, %v2963_v2  ;;  %v1419_v11 = vpop.f32.mrb[17].mxu0 }
 0x108   : > { %945 = vst.msk [vmem:[%s2867_s28 + $0x7c] sm:$0xf] %vm913_vm2, %v2173_v4  ;;  %v1029_v35 = vadd.f32 %v2391_v7, %v2958_v1  ;;  %v1023_v10 = vpop.f32.mrb[17].mxu1  ;;  %928 = vst.msk [vmem:[%s2867_s28 + $0x38] sm:$0xf] %vm913_vm2, %v2156_v5  ;;  %v1420_v13 = vadd.f32 %v2963_v2, %v1419_v11 }
 0x109   : > { %944 = vst.msk [vmem:[%s2867_s28 + $0x78] sm:$0xf] %vm913_vm2, %v2172_v6  ;;  %v1024_v12 = vadd.f32 %v2958_v1, %v1023_v10  ;;  %v2207_v15 = vpack.c.bf16 %v1425_v9, %v1425_v9 }
 0x10a   : > { %v2175_v14 = vpack.c.bf16 %v1029_v35, %v1029_v35  ;;  %v2206_v17 = vpack.c.bf16 %v1420_v13, %v1420_v13  ;;  %v2444_v19 = vpop.f32.mrb[18].mxu0 }
 0x10b   : > { %v2174_v16 = vpack.c.bf16 %v1024_v12, %v1024_v12  ;;  %v2394_v18 = vpop.f32.mrb[18].mxu1  ;;  %1707 = vst.msk [vmem:[%s2985_s20 + $0x4] sm:$0xf] %vm913_vm2, %v2207_v15  ;;  %v1435_v21 = vadd.f32 %v2444_v19, %v2963_v2  ;;  %v1429_v23 = vpop.f32.mrb[19].mxu0 }
 0x10c   : > { %1311 = vst.msk [vmem:[%s2979_s17 + $0x4] sm:$0xf] %vm913_vm2, %v2175_v14  ;;  %v1039_v20 = vadd.f32 %v2394_v18, %v2958_v1  ;;  %v1033_v22 = vpop.f32.mrb[19].mxu1  ;;  %1706 = vst.msk [vmem:[%s2985_s20] sm:$0xf] %vm913_vm2, %v2206_v17  ;;  %v1430_v25 = vadd.f32 %v2963_v2, %v1429_v23 }
 0x10d   : > { %1310 = vst.msk [vmem:[%s2979_s17] sm:$0xf] %vm913_vm2, %v2174_v16  ;;  %v1034_v24 = vadd.f32 %v2958_v1, %v1033_v22  ;;  %v2209_v27 = vpack.c.bf16 %v1435_v21, %v1435_v21 }
 0x10e   : > { %v2177_v26 = vpack.c.bf16 %v1039_v20, %v1039_v20  ;;  %v2208_v29 = vpack.c.bf16 %v1430_v25, %v1430_v25  ;;  %v2447_v31 = vpop.f32.mrb[20].mxu0 }
 0x10f   : > { %v2176_v28 = vpack.c.bf16 %v1034_v24, %v1034_v24  ;;  %v2397_v30 = vpop.f32.mrb[20].mxu1  ;;  %1709 = vst.msk [vmem:[%s2985_s20 + $0xc] sm:$0xf] %vm913_vm2, %v2209_v27  ;;  %v1445_v33 = vadd.f32 %v2447_v31, %v2963_v2  ;;  %v1439_v36 = vpop.f32.mrb[21].mxu0 }
 0x110   : > { %1313 = vst.msk [vmem:[%s2979_s17 + $0xc] sm:$0xf] %vm913_vm2, %v2177_v26  ;;  %v1049_v32 = vadd.f32 %v2397_v30, %v2958_v1  ;;  %v1043_v34 = vpop.f32.mrb[21].mxu1  ;;  %1708 = vst.msk [vmem:[%s2985_s20 + $0x8] sm:$0xf] %vm913_vm2, %v2208_v29  ;;  %v1440_v38 = vadd.f32 %v2963_v2, %v1439_v36 }
 0x111   : > { %1312 = vst.msk [vmem:[%s2979_s17 + $0x8] sm:$0xf] %vm913_vm2, %v2176_v28  ;;  %v1044_v37 = vadd.f32 %v2958_v1, %v1043_v34  ;;  %v2211_v40 = vpack.c.bf16 %v1445_v33, %v1445_v33 }
 0x112   : > { %v2179_v39 = vpack.c.bf16 %v1049_v32, %v1049_v32  ;;  %v2210_v42 = vpack.c.bf16 %v1440_v38, %v1440_v38  ;;  %v2450_v44 = vpop.f32.mrb[22].mxu0 }
 0x113   : > { %v2178_v41 = vpack.c.bf16 %v1044_v37, %v1044_v37  ;;  %v2400_v43 = vpop.f32.mrb[22].mxu1  ;;  %1711 = vst.msk [vmem:[%s2985_s20 + $0x14] sm:$0xf] %vm913_vm2, %v2211_v40  ;;  %v1455_v46 = vadd.f32 %v2450_v44, %v2963_v2  ;;  %v1449_v48 = vpop.f32.mrb[23].mxu0 }
 0x114   : > { %1315 = vst.msk [vmem:[%s2979_s17 + $0x14] sm:$0xf] %vm913_vm2, %v2179_v39  ;;  %v1059_v45 = vadd.f32 %v2400_v43, %v2958_v1  ;;  %v1053_v47 = vpop.f32.mrb[23].mxu1  ;;  %1710 = vst.msk [vmem:[%s2985_s20 + $0x10] sm:$0xf] %vm913_vm2, %v2210_v42  ;;  %v1450_v50 = vadd.f32 %v2963_v2, %v1449_v48 }
 0x115   : > { %1314 = vst.msk [vmem:[%s2979_s17 + $0x10] sm:$0xf] %vm913_vm2, %v2178_v41  ;;  %v1054_v49 = vadd.f32 %v2958_v1, %v1053_v47  ;;  %v2213_v52 = vpack.c.bf16 %v1455_v46, %v1455_v46 }
 0x116   : > { %v2181_v51 = vpack.c.bf16 %v1059_v45, %v1059_v45  ;;  %v2212_v54 = vpack.c.bf16 %v1450_v50, %v1450_v50  ;;  %v2453_v56 = vpop.f32.mrb[24].mxu0 }
 0x117   : > { %v2180_v53 = vpack.c.bf16 %v1054_v49, %v1054_v49  ;;  %v2403_v55 = vpop.f32.mrb[24].mxu1  ;;  %1713 = vst.msk [vmem:[%s2985_s20 + $0x1c] sm:$0xf] %vm913_vm2, %v2213_v52  ;;  %v1465_v58 = vadd.f32 %v2453_v56, %v2963_v2  ;;  %v1459_v60 = vpop.f32.mrb[25].mxu0 }
 0x118   : > { %1317 = vst.msk [vmem:[%s2979_s17 + $0x1c] sm:$0xf] %vm913_vm2, %v2181_v51  ;;  %v1069_v57 = vadd.f32 %v2403_v55, %v2958_v1  ;;  %v1063_v59 = vpop.f32.mrb[25].mxu1  ;;  %1712 = vst.msk [vmem:[%s2985_s20 + $0x18] sm:$0xf] %vm913_vm2, %v2212_v54  ;;  %v1460_v62 = vadd.f32 %v2963_v2, %v1459_v60 }
 0x119   : > { %1316 = vst.msk [vmem:[%s2979_s17 + $0x18] sm:$0xf] %vm913_vm2, %v2180_v53  ;;  %v1064_v61 = vadd.f32 %v2958_v1, %v1063_v59  ;;  %v2215_v0 = vpack.c.bf16 %v1465_v58, %v1465_v58 }
 0x11a   : > { %v2183_v63 = vpack.c.bf16 %v1069_v57, %v1069_v57  ;;  %v2214_v4 = vpack.c.bf16 %v1460_v62, %v1460_v62  ;;  %v2456_v6 = vpop.f32.mrb[26].mxu0 }
 0x11b   : > { %v2182_v3 = vpack.c.bf16 %v1064_v61, %v1064_v61  ;;  %v2406_v5 = vpop.f32.mrb[26].mxu1  ;;  %1715 = vst.msk [vmem:[%s2985_s20 + $0x24] sm:$0xf] %vm913_vm2, %v2215_v0  ;;  %v1475_v8 = vadd.f32 %v2456_v6, %v2963_v2  ;;  %v1469_v9 = vpop.f32.mrb[27].mxu0 }
 0x11c   : > { %1319 = vst.msk [vmem:[%s2979_s17 + $0x24] sm:$0xf] %vm913_vm2, %v2183_v63  ;;  %v1079_v7 = vadd.f32 %v2406_v5, %v2958_v1  ;;  %v1073_v35 = vpop.f32.mrb[27].mxu1  ;;  %1714 = vst.msk [vmem:[%s2985_s20 + $0x20] sm:$0xf] %vm913_vm2, %v2214_v4  ;;  %v1470_v11 = vadd.f32 %v2963_v2, %v1469_v9 }
 0x11d   : > { %1318 = vst.msk [vmem:[%s2979_s17 + $0x20] sm:$0xf] %vm913_vm2, %v2182_v3  ;;  %v1074_v10 = vadd.f32 %v2958_v1, %v1073_v35  ;;  %v2217_v13 = vpack.c.bf16 %v1475_v8, %v1475_v8 }
 0x11e   : > { %v2185_v12 = vpack.c.bf16 %v1079_v7, %v1079_v7  ;;  %v2216_v15 = vpack.c.bf16 %v1470_v11, %v1470_v11  ;;  %v2459_v17 = vpop.f32.mrb[28].mxu0 }
 0x11f   : > { %v2184_v14 = vpack.c.bf16 %v1074_v10, %v1074_v10  ;;  %v2409_v16 = vpop.f32.mrb[28].mxu1  ;;  %1717 = vst.msk [vmem:[%s2985_s20 + $0x2c] sm:$0xf] %vm913_vm2, %v2217_v13  ;;  %v1485_v19 = vadd.f32 %v2459_v17, %v2963_v2  ;;  %v1479_v21 = vpop.f32.mrb[29].mxu0 }
 0x120   : > { %1321 = vst.msk [vmem:[%s2979_s17 + $0x2c] sm:$0xf] %vm913_vm2, %v2185_v12  ;;  %v1089_v18 = vadd.f32 %v2409_v16, %v2958_v1  ;;  %v1083_v20 = vpop.f32.mrb[29].mxu1  ;;  %1716 = vst.msk [vmem:[%s2985_s20 + $0x28] sm:$0xf] %vm913_vm2, %v2216_v15  ;;  %v1480_v23 = vadd.f32 %v2963_v2, %v1479_v21 }
 0x121   : > { %1320 = vst.msk [vmem:[%s2979_s17 + $0x28] sm:$0xf] %vm913_vm2, %v2184_v14  ;;  %v1084_v22 = vadd.f32 %v2958_v1, %v1083_v20  ;;  %v2219_v25 = vpack.c.bf16 %v1485_v19, %v1485_v19 }
 0x122   : > { %v2187_v24 = vpack.c.bf16 %v1089_v18, %v1089_v18  ;;  %v2218_v27 = vpack.c.bf16 %v1480_v23, %v1480_v23  ;;  %v2462_v29 = vpop.f32.mrb[30].mxu0 }
 0x123   : > { %v2186_v26 = vpack.c.bf16 %v1084_v22, %v1084_v22  ;;  %v2412_v28 = vpop.f32.mrb[30].mxu1  ;;  %1719 = vst.msk [vmem:[%s2985_s20 + $0x34] sm:$0xf] %vm913_vm2, %v2219_v25  ;;  %v1495_v31 = vadd.f32 %v2462_v29, %v2963_v2  ;;  %v1489_v33 = vpop.f32.mrb[31].mxu0 }
 0x124   : > { %1323 = vst.msk [vmem:[%s2979_s17 + $0x34] sm:$0xf] %vm913_vm2, %v2187_v24  ;;  %v1099_v30 = vadd.f32 %v2412_v28, %v2958_v1  ;;  %v1093_v32 = vpop.f32.mrb[31].mxu1  ;;  %1718 = vst.msk [vmem:[%s2985_s20 + $0x30] sm:$0xf] %vm913_vm2, %v2218_v27  ;;  %v1490_v36 = vadd.f32 %v2963_v2, %v1489_v33 }
 0x125   : > { %1322 = vst.msk [vmem:[%s2979_s17 + $0x30] sm:$0xf] %vm913_vm2, %v2186_v26  ;;  %v1094_v34 = vadd.f32 %v2958_v1, %v1093_v32  ;;  %v2221_v38 = vpack.c.bf16 %v1495_v31, %v1495_v31 }
 0x126   : > { %v2189_v37 = vpack.c.bf16 %v1099_v30, %v1099_v30  ;;  %v2220_v40 = vpack.c.bf16 %v1490_v36, %v1490_v36  ;;  %v2465_v42 = vpop.f32.mrb[32].mxu0 }
 0x127   : > { %v2188_v39 = vpack.c.bf16 %v1094_v34, %v1094_v34  ;;  %v2415_v41 = vpop.f32.mrb[32].mxu1  ;;  %1721 = vst.msk [vmem:[%s2985_s20 + $0x3c] sm:$0xf] %vm913_vm2, %v2221_v38  ;;  %v1505_v44 = vadd.f32 %v2465_v42, %v2963_v2  ;;  %v1499_v46 = vpop.f32.mrb[33].mxu0 }
 0x128   : > { %1325 = vst.msk [vmem:[%s2979_s17 + $0x3c] sm:$0xf] %vm913_vm2, %v2189_v37  ;;  %v1109_v43 = vadd.f32 %v2415_v41, %v2958_v1  ;;  %v1103_v45 = vpop.f32.mrb[33].mxu1  ;;  %1720 = vst.msk [vmem:[%s2985_s20 + $0x38] sm:$0xf] %vm913_vm2, %v2220_v40  ;;  %v1500_v48 = vadd.f32 %v2963_v2, %v1499_v46 }
 0x129   : > { %1324 = vst.msk [vmem:[%s2979_s17 + $0x38] sm:$0xf] %vm913_vm2, %v2188_v39  ;;  %v1104_v47 = vadd.f32 %v2958_v1, %v1103_v45  ;;  %v2223_v50 = vpack.c.bf16 %v1505_v44, %v1505_v44 }
 0x12a   : > { %v2191_v49 = vpack.c.bf16 %v1109_v43, %v1109_v43  ;;  %v2222_v52 = vpack.c.bf16 %v1500_v48, %v1500_v48  ;;  %v2468_v54 = vpop.f32.mrb[34].mxu0 }
 0x12b   : > { %v2190_v51 = vpack.c.bf16 %v1104_v47, %v1104_v47  ;;  %v2418_v53 = vpop.f32.mrb[34].mxu1  ;;  %1723 = vst.msk [vmem:[%s2985_s20 + $0x44] sm:$0xf] %vm913_vm2, %v2223_v50  ;;  %v1515_v56 = vadd.f32 %v2468_v54, %v2963_v2  ;;  %v1509_v58 = vpop.f32.mrb[35].mxu0 }
 0x12c   : > { %1327 = vst.msk [vmem:[%s2979_s17 + $0x44] sm:$0xf] %vm913_vm2, %v2191_v49  ;;  %v1119_v55 = vadd.f32 %v2418_v53, %v2958_v1  ;;  %v1113_v57 = vpop.f32.mrb[35].mxu1  ;;  %1722 = vst.msk [vmem:[%s2985_s20 + $0x40] sm:$0xf] %vm913_vm2, %v2222_v52  ;;  %v1510_v60 = vadd.f32 %v2963_v2, %v1509_v58 }
 0x12d   : > { %1326 = vst.msk [vmem:[%s2979_s17 + $0x40] sm:$0xf] %vm913_vm2, %v2190_v51  ;;  %v1114_v59 = vadd.f32 %v2958_v1, %v1113_v57  ;;  %v2225_v62 = vpack.c.bf16 %v1515_v56, %v1515_v56 }
 0x12e   : > { %v2193_v61 = vpack.c.bf16 %v1119_v55, %v1119_v55  ;;  %v2224_v0 = vpack.c.bf16 %v1510_v60, %v1510_v60  ;;  %v2471_v4 = vpop.f32.mrb[36].mxu0 }
 0x12f   : > { %v2192_v63 = vpack.c.bf16 %v1114_v59, %v1114_v59  ;;  %v2421_v3 = vpop.f32.mrb[36].mxu1  ;;  %1725 = vst.msk [vmem:[%s2985_s20 + $0x4c] sm:$0xf] %vm913_vm2, %v2225_v62  ;;  %v1525_v6 = vadd.f32 %v2471_v4, %v2963_v2  ;;  %v1519_v8 = vpop.f32.mrb[37].mxu0 }
 0x130   : > { %1329 = vst.msk [vmem:[%s2979_s17 + $0x4c] sm:$0xf] %vm913_vm2, %v2193_v61  ;;  %v1129_v5 = vadd.f32 %v2421_v3, %v2958_v1  ;;  %v1123_v7 = vpop.f32.mrb[37].mxu1  ;;  %1724 = vst.msk [vmem:[%s2985_s20 + $0x48] sm:$0xf] %vm913_vm2, %v2224_v0  ;;  %v1520_v9 = vadd.f32 %v2963_v2, %v1519_v8 }
 0x131   : > { %1328 = vst.msk [vmem:[%s2979_s17 + $0x48] sm:$0xf] %vm913_vm2, %v2192_v63  ;;  %v1124_v35 = vadd.f32 %v2958_v1, %v1123_v7  ;;  %v2227_v11 = vpack.c.bf16 %v1525_v6, %v1525_v6 }
 0x132   : > { %v2195_v10 = vpack.c.bf16 %v1129_v5, %v1129_v5  ;;  %v2226_v13 = vpack.c.bf16 %v1520_v9, %v1520_v9  ;;  %v2474_v15 = vpop.f32.mrb[38].mxu0 }
 0x133   : > { %v2194_v12 = vpack.c.bf16 %v1124_v35, %v1124_v35  ;;  %v2424_v14 = vpop.f32.mrb[38].mxu1  ;;  %1727 = vst.msk [vmem:[%s2985_s20 + $0x54] sm:$0xf] %vm913_vm2, %v2227_v11  ;;  %v1535_v17 = vadd.f32 %v2474_v15, %v2963_v2  ;;  %v1529_v19 = vpop.f32.mrb[39].mxu0 }
 0x134   : > { %1331 = vst.msk [vmem:[%s2979_s17 + $0x54] sm:$0xf] %vm913_vm2, %v2195_v10  ;;  %v1139_v16 = vadd.f32 %v2424_v14, %v2958_v1  ;;  %v1133_v18 = vpop.f32.mrb[39].mxu1  ;;  %1726 = vst.msk [vmem:[%s2985_s20 + $0x50] sm:$0xf] %vm913_vm2, %v2226_v13  ;;  %v1530_v21 = vadd.f32 %v2963_v2, %v1529_v19 }
 0x135   : > { %1330 = vst.msk [vmem:[%s2979_s17 + $0x50] sm:$0xf] %vm913_vm2, %v2194_v12  ;;  %v1134_v20 = vadd.f32 %v2958_v1, %v1133_v18  ;;  %v2229_v23 = vpack.c.bf16 %v1535_v17, %v1535_v17 }
 0x136   : > { %v2197_v22 = vpack.c.bf16 %v1139_v16, %v1139_v16  ;;  %v2228_v25 = vpack.c.bf16 %v1530_v21, %v1530_v21  ;;  %v2477_v27 = vpop.f32.mrb[40].mxu0 }
 0x137   : > { %v2196_v24 = vpack.c.bf16 %v1134_v20, %v1134_v20  ;;  %v2427_v26 = vpop.f32.mrb[40].mxu1  ;;  %1729 = vst.msk [vmem:[%s2985_s20 + $0x5c] sm:$0xf] %vm913_vm2, %v2229_v23  ;;  %v1545_v29 = vadd.f32 %v2477_v27, %v2963_v2  ;;  %v1539_v31 = vpop.f32.mrb[41].mxu0 }
 0x138   : > { %1333 = vst.msk [vmem:[%s2979_s17 + $0x5c] sm:$0xf] %vm913_vm2, %v2197_v22  ;;  %v1149_v28 = vadd.f32 %v2427_v26, %v2958_v1  ;;  %v1143_v30 = vpop.f32.mrb[41].mxu1  ;;  %1728 = vst.msk [vmem:[%s2985_s20 + $0x58] sm:$0xf] %vm913_vm2, %v2228_v25  ;;  %v1540_v33 = vadd.f32 %v2963_v2, %v1539_v31 }
 0x139   : > { %1332 = vst.msk [vmem:[%s2979_s17 + $0x58] sm:$0xf] %vm913_vm2, %v2196_v24  ;;  %v1144_v32 = vadd.f32 %v2958_v1, %v1143_v30  ;;  %v2231_v36 = vpack.c.bf16 %v1545_v29, %v1545_v29 }
 0x13a   : > { %v2199_v34 = vpack.c.bf16 %v1149_v28, %v1149_v28  ;;  %v2230_v38 = vpack.c.bf16 %v1540_v33, %v1540_v33  ;;  %v2480_v40 = vpop.f32.mrb[42].mxu0 }
 0x13b   : > { %v2198_v37 = vpack.c.bf16 %v1144_v32, %v1144_v32  ;;  %v2430_v39 = vpop.f32.mrb[42].mxu1  ;;  %1731 = vst.msk [vmem:[%s2985_s20 + $0x64] sm:$0xf] %vm913_vm2, %v2231_v36  ;;  %v1555_v42 = vadd.f32 %v2480_v40, %v2963_v2  ;;  %v1549_v44 = vpop.f32.mrb[43].mxu0 }
 0x13c   : > { %1335 = vst.msk [vmem:[%s2979_s17 + $0x64] sm:$0xf] %vm913_vm2, %v2199_v34  ;;  %v1159_v41 = vadd.f32 %v2430_v39, %v2958_v1  ;;  %v1153_v43 = vpop.f32.mrb[43].mxu1  ;;  %1730 = vst.msk [vmem:[%s2985_s20 + $0x60] sm:$0xf] %vm913_vm2, %v2230_v38  ;;  %v1550_v46 = vadd.f32 %v2963_v2, %v1549_v44 }
 0x13d   : > { %1334 = vst.msk [vmem:[%s2979_s17 + $0x60] sm:$0xf] %vm913_vm2, %v2198_v37  ;;  %v1154_v45 = vadd.f32 %v2958_v1, %v1153_v43  ;;  %v2233_v48 = vpack.c.bf16 %v1555_v42, %v1555_v42 }
 0x13e   : > { %v2201_v47 = vpack.c.bf16 %v1159_v41, %v1159_v41  ;;  %v2232_v50 = vpack.c.bf16 %v1550_v46, %v1550_v46  ;;  %v2483_v52 = vpop.f32.mrb[44].mxu0 }
 0x13f   : > { %v2200_v49 = vpack.c.bf16 %v1154_v45, %v1154_v45  ;;  %v2433_v51 = vpop.f32.mrb[44].mxu1  ;;  %1733 = vst.msk [vmem:[%s2985_s20 + $0x6c] sm:$0xf] %vm913_vm2, %v2233_v48  ;;  %v1565_v54 = vadd.f32 %v2483_v52, %v2963_v2  ;;  %v1559_v56 = vpop.f32.mrb[45].mxu0 }
 0x140   : > { %1337 = vst.msk [vmem:[%s2979_s17 + $0x6c] sm:$0xf] %vm913_vm2, %v2201_v47  ;;  %v1169_v53 = vadd.f32 %v2433_v51, %v2958_v1  ;;  %v1163_v55 = vpop.f32.mrb[45].mxu1  ;;  %1732 = vst.msk [vmem:[%s2985_s20 + $0x68] sm:$0xf] %vm913_vm2, %v2232_v50  ;;  %v1560_v58 = vadd.f32 %v2963_v2, %v1559_v56 }
 0x141   : > { %1336 = vst.msk [vmem:[%s2979_s17 + $0x68] sm:$0xf] %vm913_vm2, %v2200_v49  ;;  %v1164_v57 = vadd.f32 %v2958_v1, %v1163_v55  ;;  %v2235_v60 = vpack.c.bf16 %v1565_v54, %v1565_v54 }
 0x142   : > { %v2203_v59 = vpack.c.bf16 %v1169_v53, %v1169_v53  ;;  %v2234_v62 = vpack.c.bf16 %v1560_v58, %v1560_v58  ;;  %v2486_v0 = vpop.f32.mrb[46].mxu0 }
 0x143   : > { %v2202_v61 = vpack.c.bf16 %v1164_v57, %v1164_v57  ;;  %v2436_v63 = vpop.f32.mrb[46].mxu1  ;;  %1735 = vst.msk [vmem:[%s2985_s20 + $0x74] sm:$0xf] %vm913_vm2, %v2235_v60  ;;  %v1575_v4 = vadd.f32 %v2486_v0, %v2963_v2  ;;  %v1569_v6 = vpop.f32.mrb[47].mxu0 }
 0x144   : > { %1339 = vst.msk [vmem:[%s2979_s17 + $0x74] sm:$0xf] %vm913_vm2, %v2203_v59  ;;  %v1179_v3 = vadd.f32 %v2436_v63, %v2958_v1  ;;  %v1173_v5 = vpop.f32.mrb[47].mxu1  ;;  %1734 = vst.msk [vmem:[%s2985_s20 + $0x70] sm:$0xf] %vm913_vm2, %v2234_v62  ;;  %v1570_v8 = vadd.f32 %v2963_v2, %v1569_v6 }
 0x145   : > { %1338 = vst.msk [vmem:[%s2979_s17 + $0x70] sm:$0xf] %vm913_vm2, %v2202_v61  ;;  %v1174_v7 = vadd.f32 %v2958_v1, %v1173_v5  ;;  %v2237_v9 = vpack.c.bf16 %v1575_v4, %v1575_v4 }
 0x146   : > { %v2205_v35 = vpack.c.bf16 %v1179_v3, %v1179_v3  ;;  %v2236_v11 = vpack.c.bf16 %v1570_v8, %v1570_v8 }
 0x147   : > { %v2204_v10 = vpack.c.bf16 %v1174_v7, %v1174_v7  ;;  %1737 = vst.msk [vmem:[%s2985_s20 + $0x7c] sm:$0xf] %vm913_vm2, %v2237_v9 }
 0x148   : > { %1341 = vst.msk [vmem:[%s2979_s17 + $0x7c] sm:$0xf] %vm913_vm2, %v2205_v35  ;;  %1736 = vst.msk [vmem:[%s2985_s20 + $0x78] sm:$0xf] %vm913_vm2, %v2236_v11 }
 0x149   : > { %1340 = vst.msk [vmem:[%s2979_s17 + $0x78] sm:$0xf] %vm913_vm2, %v2204_v10 }
 0x14a PF: > { %s20_s11 = sadd.s32 1, %s2535_s11   ;;  %s3196_s30 = smov %s2531_s10 }
 0x14b   : > { %p17_p5 = scmp.ge.s32.totalorder %s20_s11, 4   ;;  %s3197_s10 = smov %s3199_s12 }
 0x14d   :  { %19 = sbr.rel (!%p17_p5) target bundleno = 2 (0x2), region = 102 }

</bundles_post_ra>
